<compile_context>
chip_gen: v7x
topology: tpu7x:2x2x1
jax: 0.10.0
libtpu: 0.0.40
codegen_flags: <defaults>
</compile_context>

<pallas_src>
import functools
import math

import numpy as np
import jax
import jax.numpy as jnp
from jax.experimental import pallas as pl
from jax.experimental.pallas import tpu as pltpu

# ---------------- configuration (small shapes consistent with the module) ----------
IMAGE_SIZE = (8, 8, 8)     # (D, H, W)
PATCH_SIZE = (4, 4, 4)     # (p0, p1, p2)
IN_CH = 2
OUT_CH = 1
EMBED = 32
NUM_BLOCKS = 2
NUM_HEADS = 4
DROPOUT = 0.0              # identity in this deterministic forward
BATCH = 2

P0, P1, P2 = PATCH_SIZE
DP, HP, WP = (IMAGE_SIZE[0] // P0, IMAGE_SIZE[1] // P1, IMAGE_SIZE[2] // P2)
NUM_PATCHES = DP * HP * WP                       # T = 8
PATCH_DIM = IN_CH * P0 * P1 * P2                 # P = 128 (PatchEmbedding3D Linear in)
OUT_PATCH_DIM = OUT_CH * P0 * P1 * P2            # 64  (OutputProjection Linear out)
OUT_PAD = 128                                    # lane-dense padded output width
HEAD_DIM = EMBED // NUM_HEADS                    # 8


def _make_masks(batch):
    """Precompute the two static attention masks for the batch-merged layout.

    Rows of the 'wide' tensors are indexed r = h*BT + b*T + t  (BT = batch*T).
      lmask (H*BT, E):   1.0 where lane c belongs to head h = r // BT, else 0.0.
      bmask (H*BT, BT):  0.0 where column token belongs to the same batch element
                         as the row token, else -1e30 (additive mask).
    """
    bt = batch * NUM_PATCHES
    rows = NUM_HEADS * bt
    r = np.arange(rows)
    head = r // bt
    tok = r % bt
    lane = np.arange(EMBED)
    lmask = (lane[None, :] // HEAD_DIM == head[:, None]).astype(np.float32)
    col = np.arange(bt)
    bmask = np.where((tok[:, None] // NUM_PATCHES) == (col[None, :] // NUM_PATCHES),
                     0.0, -1e30).astype(np.float32)
    return jnp.asarray(lmask), jnp.asarray(bmask)


# --------------------------- Pallas kernel -----------------------------------------
def vit_kernel(patches_ref, lmask_ref, bmask_ref, we_ref, pos_ref,
               ln1g_ref, ln1b_ref,
               wq_ref, wk_ref, wv_ref, bq_ref, bk_ref, bv_ref, wo_ref, bo_ref,
               ln2g_ref, ln2b_ref, w1_ref, b1_ref, w2_ref, b2_ref,
               wout_ref, bout_ref, out_ref,
               *, num_blocks, num_heads, bt, head_dim):
    """Full ViT-for-segmentation forward for the WHOLE (batch-merged) problem.

    patches_ref: (BT, P) bf16      out_ref: (BT, OUT_PAD) f32 (lane-dense, padded)
    Weights are pre-transposed and stored in bf16; accumulation is f32.
    """
    f32 = jnp.float32
    bf16 = jnp.bfloat16
    scale = 1.0 / math.sqrt(head_dim)
    inv_sqrt2 = 1.0 / math.sqrt(2.0)

    def layer_norm(z, g, b):
        mu = jnp.mean(z, axis=-1, keepdims=True)
        var = jnp.mean(jnp.square(z - mu), axis=-1, keepdims=True)
        return (z - mu) * jax.lax.rsqrt(var + 1e-5) * g + b

    lmask = lmask_ref[...]                                           # (H*BT, E)
    bmask = bmask_ref[...]                                           # (H*BT, BT)

    # Patch embedding (BatchNorm3d already folded into we/pos in the wrapper)
    # + positional embedding (pos_ref also carries the embedding bias).
    x = jnp.dot(patches_ref[...], we_ref[...],
                preferred_element_type=f32) + pos_ref[...]           # (BT, E) f32

    for l in range(num_blocks):
        # ---- self-attention sub-block: x = x + MHA(LN1(x)) ----
        y = layer_norm(x, ln1g_ref[l:l + 1], ln1b_ref[l:l + 1]).astype(bf16)
        q = jnp.dot(y, wq_ref[l], preferred_element_type=f32) + bq_ref[l:l + 1]
        k = jnp.dot(y, wk_ref[l], preferred_element_type=f32) + bk_ref[l:l + 1]
        v = jnp.dot(y, wv_ref[l], preferred_element_type=f32) + bv_ref[l:l + 1]

        # Head separation via sublane-tiled Q * per-head lane mask (no slicing):
        # row h*BT+r of q_wide holds token r's Q restricted to head h's lanes.
        q_wide = (jnp.concatenate([q] * num_heads, axis=0) * lmask).astype(bf16)
        # All heads' scores in one matmul; cross-batch columns masked additively.
        s = jax.lax.dot_general(q_wide, k.astype(bf16),
                                (((1,), (1,)), ((), ())),
                                preferred_element_type=f32) * scale  # (H*BT, BT)
        s = s + bmask
        # No max-subtraction: logits are O(1) at these scales and the -1e30 masked
        # entries underflow exp -> 0 (numerics-vs-speed trade-off, see review).
        e = jnp.exp(s)
        a = (e * pl.reciprocal(jnp.sum(e, axis=-1, keepdims=True),
                               approx=False)).astype(bf16)
        # A @ V, then keep only each block's own head lanes.
        o_wide = jnp.dot(a, v.astype(bf16),
                         preferred_element_type=f32) * lmask         # (H*BT, E)
        # Reduce the H sublane blocks -> heads concatenated along lanes (H-1 vadds).
        oc = o_wide[0:bt]
        for h in range(1, num_heads):
            oc = oc + o_wide[h * bt:(h + 1) * bt]                    # (BT, E)
        x = x + jnp.dot(oc.astype(bf16), wo_ref[l],
                        preferred_element_type=f32) + bo_ref[l:l + 1]

        # ---- MLP sub-block: x = x + MLP(LN2(x)) ----
        y2 = layer_norm(x, ln2g_ref[l:l + 1], ln2b_ref[l:l + 1]).astype(bf16)
        h1 = jnp.dot(y2, w1_ref[l], preferred_element_type=f32) + b1_ref[l:l + 1]
        h1 = 0.5 * h1 * (1.0 + jax.lax.erf(h1 * inv_sqrt2))          # exact GELU
        x = x + jnp.dot(h1.astype(bf16), w2_ref[l],
                        preferred_element_type=f32) + b2_ref[l:l + 1]

    # OutputProjection linear (zero-padded to 128 lanes -> full-vreg unmasked store;
    # padded lanes give sigmoid(0)=0.5 and are sliced off in the wrapper).
    out = jnp.dot(x.astype(bf16), wout_ref[...],
                  preferred_element_type=f32) + bout_ref[...]
    out_ref[...] = jax.nn.sigmoid(out)                               # (BT, OUT_PAD)


# --------------------------- parameters --------------------------------------------
def make_params(key):
    ks = jax.random.split(key, 20)

    def nrm(k, shape, s=0.02):
        return (jax.random.normal(k, shape) * s).astype(jnp.float32)

    L, E, P, Po, T = NUM_BLOCKS, EMBED, PATCH_DIM, OUT_PATCH_DIM, NUM_PATCHES
    bf = jnp.bfloat16
    wout_t = jnp.pad(nrm(ks[11], (E, Po)), ((0, 0), (0, OUT_PAD - Po)))
    bout = jnp.pad(nrm(ks[12], (1, Po), 0.01), ((0, 0), (0, OUT_PAD - Po)))
    return dict(
        bn_g=jnp.ones((IN_CH,), jnp.float32),
        bn_b=jnp.zeros((IN_CH,), jnp.float32),
        we_t=nrm(ks[0], (P, E)),                  # f32: BN scale folded in per call
        be=nrm(ks[1], (1, E), 0.01),
        pos=jax.random.normal(ks[2], (1, T, E)).astype(jnp.float32),
        ln1g=jnp.ones((L, E), jnp.float32),
        ln1b=jnp.zeros((L, E), jnp.float32),
        wq_t=nrm(ks[3], (L, E, E)).astype(bf),    # in_proj q/k/v weights, transposed
        wk_t=nrm(ks[4], (L, E, E)).astype(bf),
        wv_t=nrm(ks[5], (L, E, E)).astype(bf),
        bq=nrm(ks[6], (L, E), 0.01),
        bk=nrm(ks[7], (L, E), 0.01),
        bv=nrm(ks[8], (L, E), 0.01),
        wo_t=nrm(ks[9], (L, E, E)).astype(bf),    # out_proj.weight.T
        bo=nrm(ks[10], (L, E), 0.01),
        ln2g=jnp.ones((L, E), jnp.float32),
        ln2b=jnp.zeros((L, E), jnp.float32),
        w1_t=nrm(ks[13], (L, E, 4 * E)).astype(bf),
        b1=nrm(ks[14], (L, 4 * E), 0.01),
        w2_t=nrm(ks[15], (L, 4 * E, E)).astype(bf),
        b2=nrm(ks[16], (L, E), 0.01),
        wout_t=wout_t.astype(bf),                 # lane-dense zero-pad to 128 lanes
        bout=bout,
    )


# --------------------------- forward wrapper ----------------------------------------
@jax.jit
def vit_forward(x, params):
    B, C, D, H, W = x.shape
    T, P, Po, E, L = NUM_PATCHES, PATCH_DIM, OUT_PATCH_DIM, EMBED, NUM_BLOCKS
    BT = B * T
    x = x.astype(jnp.float32)

    # BatchNorm3d with training-mode batch statistics (PyTorch module default after
    # construction); the resulting per-channel affine is folded into the patch
    # embedding weight/bias, so the kernel contains no BN ops at all.
    mean = jnp.mean(x, axis=(0, 2, 3, 4))                    # (C,)
    var = jnp.var(x, axis=(0, 2, 3, 4))                      # biased, as PyTorch
    ch_scale = params["bn_g"] * jax.lax.rsqrt(var + 1e-5)
    ch_shift = params["bn_b"] - mean * ch_scale
    rep = P0 * P1 * P2                                       # channel-major patches
    bn_scale = jnp.repeat(ch_scale, rep)                     # (P,)
    bn_shift = jnp.repeat(ch_shift, rep)                     # (P,)
    we_eff = (params["we_t"] * bn_scale[:, None]).astype(jnp.bfloat16)   # (P, E)
    bias_eff = params["be"] + bn_shift[None, :] @ params["we_t"]         # (1, E)
    pos_eff = jnp.tile(params["pos"].reshape(T, E), (B, 1)) + bias_eff   # (BT, E)

    # ImageToPatches3D (unfoldNd): (B*T, C*p0*p1*p2), channel-major within a patch.
    patches = x.reshape(B, C, DP, P0, HP, P1, WP, P2)
    patches = jnp.transpose(patches, (0, 2, 4, 6, 1, 3, 5, 7)).reshape(BT, P)
    patches = patches.astype(jnp.bfloat16)

    lmask, bmask = _make_masks(B)

    kernel = functools.partial(vit_kernel, num_blocks=L, num_heads=NUM_HEADS,
                               bt=BT, head_dim=HEAD_DIM)
    vspec = pl.BlockSpec(memory_space=pltpu.MemorySpace.VMEM)
    # Grid-less call: whole working set (<1 MiB) lives in VMEM; no grid-step overhead.
    out_pad = pl.pallas_call(
        kernel,
        out_shape=jax.ShapeDtypeStruct((BT, OUT_PAD), jnp.float32),
        in_specs=[vspec] * 23,
        out_specs=vspec,
    )(patches, lmask, bmask, we_eff, pos_eff,
      params["ln1g"], params["ln1b"],
      params["wq_t"], params["wk_t"], params["wv_t"],
      params["bq"], params["bk"], params["bv"],
      params["wo_t"], params["bo"],
      params["ln2g"], params["ln2b"],
      params["w1_t"], params["b1"], params["w2_t"], params["b2"],
      params["wout_t"], params["bout"])

    # strip lane padding, then OutputProjection fold (foldNd) back to (B,C_out,D,H,W)
    out = out_pad[:, :Po].reshape(B, T, Po)
    y = out.reshape(B, DP, HP, WP, OUT_CH, P0, P1, P2)
    y = jnp.transpose(y, (0, 4, 1, 5, 2, 6, 3, 7)).reshape(B, OUT_CH, D, H, W)
    return y


# --------------------------- main ----------------------------------------------------
if __name__ == "__main__":
    key = jax.random.PRNGKey(0)
    kx, kp = jax.random.split(key)
    x = jax.random.normal(kx, (BATCH, IN_CH) + IMAGE_SIZE, dtype=jnp.float32)
    params = make_params(kp)

    y = vit_forward(x, params)
    y = jax.block_until_ready(y)

    assert y.shape == (BATCH, OUT_CH) + IMAGE_SIZE, y.shape
    assert bool(jnp.all(jnp.isfinite(y)))
    assert bool(jnp.all((y > 0.0) & (y < 1.0)))   # sigmoid output range
    print("KERNEL_OK")
</pallas_src>

<mosaic_0001>
module attributes {stable_mosaic.version = 11 : i64} {
  func.func @vit_kernel(%arg0: memref<16x128xbf16, #tpu.memory_space<vmem>>, %arg1: memref<64x32xf32, #tpu.memory_space<vmem>>, %arg2: memref<64x16xf32, #tpu.memory_space<vmem>>, %arg3: memref<128x32xbf16, #tpu.memory_space<vmem>>, %arg4: memref<16x32xf32, #tpu.memory_space<vmem>>, %arg5: memref<2x32xf32, #tpu.memory_space<vmem>>, %arg6: memref<2x32xf32, #tpu.memory_space<vmem>>, %arg7: memref<2x32x32xbf16, #tpu.memory_space<vmem>>, %arg8: memref<2x32x32xbf16, #tpu.memory_space<vmem>>, %arg9: memref<2x32x32xbf16, #tpu.memory_space<vmem>>, %arg10: memref<2x32xf32, #tpu.memory_space<vmem>>, %arg11: memref<2x32xf32, #tpu.memory_space<vmem>>, %arg12: memref<2x32xf32, #tpu.memory_space<vmem>>, %arg13: memref<2x32x32xbf16, #tpu.memory_space<vmem>>, %arg14: memref<2x32xf32, #tpu.memory_space<vmem>>, %arg15: memref<2x32xf32, #tpu.memory_space<vmem>>, %arg16: memref<2x32xf32, #tpu.memory_space<vmem>>, %arg17: memref<2x32x128xbf16, #tpu.memory_space<vmem>>, %arg18: memref<2x128xf32, #tpu.memory_space<vmem>>, %arg19: memref<2x128x32xbf16, #tpu.memory_space<vmem>>, %arg20: memref<2x32xf32, #tpu.memory_space<vmem>>, %arg21: memref<32x128xbf16, #tpu.memory_space<vmem>>, %arg22: memref<1x128xf32, #tpu.memory_space<vmem>>, %arg23: memref<16x128xf32, #tpu.memory_space<vmem>>) attributes {dimension_semantics = [], scalar_prefetch = 0 : i64, scratch_operands = 0 : i64, tpu.core_type = #tpu.core_type<tc>} {
    %c0 = arith.constant 0 : index
    %c0_0 = arith.constant 0 : index
    %0 = vector.load %arg1[%c0, %c0_0] : memref<64x32xf32, #tpu.memory_space<vmem>>, vector<64x32xf32>
    %c0_1 = arith.constant 0 : index
    %c0_2 = arith.constant 0 : index
    %1 = vector.load %arg2[%c0_1, %c0_2] : memref<64x16xf32, #tpu.memory_space<vmem>>, vector<64x16xf32>
    %c0_3 = arith.constant 0 : index
    %c0_4 = arith.constant 0 : index
    %2 = vector.load %arg0[%c0_3, %c0_4] : memref<16x128xbf16, #tpu.memory_space<vmem>>, vector<16x128xbf16>
    %c0_5 = arith.constant 0 : index
    %c0_6 = arith.constant 0 : index
    %3 = vector.load %arg3[%c0_5, %c0_6] : memref<128x32xbf16, #tpu.memory_space<vmem>>, vector<128x32xbf16>
    %cst = arith.constant dense<0.000000e+00> : vector<16x32xf32>
    %4 = tpu.matmul %2, %3, %cst {dimension_numbers = #tpu.dot_dimension_numbers<[1], [0], [0], [1], [0, 0, 1, 1], [], []>} : vector<16x128xbf16>, vector<128x32xbf16>, vector<16x32xf32> -> vector<16x32xf32>
    %c0_7 = arith.constant 0 : index
    %c0_8 = arith.constant 0 : index
    %5 = vector.load %arg4[%c0_7, %c0_8] : memref<16x32xf32, #tpu.memory_space<vmem>>, vector<16x32xf32>
    %6 = arith.addf %4, %5 : vector<16x32xf32>
    %c0_9 = arith.constant 0 : index
    %c0_10 = arith.constant 0 : index
    %7 = vector.load %arg5[%c0_9, %c0_10] : memref<2x32xf32, #tpu.memory_space<vmem>>, vector<1x32xf32>
    %c0_11 = arith.constant 0 : index
    %c0_12 = arith.constant 0 : index
    %8 = vector.load %arg6[%c0_11, %c0_12] : memref<2x32xf32, #tpu.memory_space<vmem>>, vector<1x32xf32>
    %cst_13 = arith.constant dense<0.000000e+00> : vector<16xf32>
    %9 = vector.multi_reduction <add>, %6, %cst_13 [1] : vector<16x32xf32> to vector<16xf32>
    %10 = vector.shape_cast %9 : vector<16xf32> to vector<16x1xf32>
    %cst_14 = arith.constant 3.200000e+01 : f32
    %11 = vector.broadcast %cst_14 : f32 to vector<16x1xf32>
    %12 = arith.divf %10, %11 : vector<16x1xf32>
    %13 = vector.broadcast %12 : vector<16x1xf32> to vector<16x32xf32>
    %14 = arith.subf %6, %13 : vector<16x32xf32>
    %15 = arith.mulf %14, %14 : vector<16x32xf32>
    %cst_15 = arith.constant dense<0.000000e+00> : vector<16xf32>
    %16 = vector.multi_reduction <add>, %15, %cst_15 [1] : vector<16x32xf32> to vector<16xf32>
    %17 = vector.shape_cast %16 : vector<16xf32> to vector<16x1xf32>
    %cst_16 = arith.constant 3.200000e+01 : f32
    %18 = vector.broadcast %cst_16 : f32 to vector<16x1xf32>
    %19 = arith.divf %17, %18 : vector<16x1xf32>
    %20 = vector.broadcast %12 : vector<16x1xf32> to vector<16x32xf32>
    %21 = arith.subf %6, %20 : vector<16x32xf32>
    %cst_17 = arith.constant 9.99999974E-6 : f32
    %22 = vector.broadcast %cst_17 : f32 to vector<16x1xf32>
    %23 = arith.addf %19, %22 : vector<16x1xf32>
    %24 = math.rsqrt %23 : vector<16x1xf32>
    %25 = vector.broadcast %24 : vector<16x1xf32> to vector<16x32xf32>
    %26 = arith.mulf %21, %25 : vector<16x32xf32>
    %27 = vector.broadcast %7 : vector<1x32xf32> to vector<16x32xf32>
    %28 = arith.mulf %26, %27 : vector<16x32xf32>
    %29 = vector.broadcast %8 : vector<1x32xf32> to vector<16x32xf32>
    %30 = arith.addf %28, %29 : vector<16x32xf32>
    %31 = arith.truncf %30 : vector<16x32xf32> to vector<16x32xbf16>
    %c0_18 = arith.constant 0 : index
    %c0_19 = arith.constant 0 : index
    %c0_20 = arith.constant 0 : index
    %32 = vector.load %arg7[%c0_18, %c0_19, %c0_20] : memref<2x32x32xbf16, #tpu.memory_space<vmem>>, vector<1x32x32xbf16>
    %33 = vector.shape_cast %32 : vector<1x32x32xbf16> to vector<32x32xbf16>
    %cst_21 = arith.constant dense<0.000000e+00> : vector<16x32xf32>
    %34 = tpu.matmul %31, %33, %cst_21 {dimension_numbers = #tpu.dot_dimension_numbers<[1], [0], [0], [1], [0, 0, 1, 1], [], []>} : vector<16x32xbf16>, vector<32x32xbf16>, vector<16x32xf32> -> vector<16x32xf32>
    %c0_22 = arith.constant 0 : index
    %c0_23 = arith.constant 0 : index
    %35 = vector.load %arg10[%c0_22, %c0_23] : memref<2x32xf32, #tpu.memory_space<vmem>>, vector<1x32xf32>
    %36 = vector.broadcast %35 : vector<1x32xf32> to vector<16x32xf32>
    %37 = arith.addf %34, %36 : vector<16x32xf32>
    %c0_24 = arith.constant 0 : index
    %c0_25 = arith.constant 0 : index
    %c0_26 = arith.constant 0 : index
    %38 = vector.load %arg8[%c0_24, %c0_25, %c0_26] : memref<2x32x32xbf16, #tpu.memory_space<vmem>>, vector<1x32x32xbf16>
    %39 = vector.shape_cast %38 : vector<1x32x32xbf16> to vector<32x32xbf16>
    %cst_27 = arith.constant dense<0.000000e+00> : vector<16x32xf32>
    %40 = tpu.matmul %31, %39, %cst_27 {dimension_numbers = #tpu.dot_dimension_numbers<[1], [0], [0], [1], [0, 0, 1, 1], [], []>} : vector<16x32xbf16>, vector<32x32xbf16>, vector<16x32xf32> -> vector<16x32xf32>
    %c0_28 = arith.constant 0 : index
    %c0_29 = arith.constant 0 : index
    %41 = vector.load %arg11[%c0_28, %c0_29] : memref<2x32xf32, #tpu.memory_space<vmem>>, vector<1x32xf32>
    %42 = vector.broadcast %41 : vector<1x32xf32> to vector<16x32xf32>
    %43 = arith.addf %40, %42 : vector<16x32xf32>
    %c0_30 = arith.constant 0 : index
    %c0_31 = arith.constant 0 : index
    %c0_32 = arith.constant 0 : index
    %44 = vector.load %arg9[%c0_30, %c0_31, %c0_32] : memref<2x32x32xbf16, #tpu.memory_space<vmem>>, vector<1x32x32xbf16>
    %45 = vector.shape_cast %44 : vector<1x32x32xbf16> to vector<32x32xbf16>
    %cst_33 = arith.constant dense<0.000000e+00> : vector<16x32xf32>
    %46 = tpu.matmul %31, %45, %cst_33 {dimension_numbers = #tpu.dot_dimension_numbers<[1], [0], [0], [1], [0, 0, 1, 1], [], []>} : vector<16x32xbf16>, vector<32x32xbf16>, vector<16x32xf32> -> vector<16x32xf32>
    %c0_34 = arith.constant 0 : index
    %c0_35 = arith.constant 0 : index
    %47 = vector.load %arg12[%c0_34, %c0_35] : memref<2x32xf32, #tpu.memory_space<vmem>>, vector<1x32xf32>
    %48 = vector.broadcast %47 : vector<1x32xf32> to vector<16x32xf32>
    %49 = arith.addf %46, %48 : vector<16x32xf32>
    %50 = tpu.concatenate %37, %37, %37, %37 in 0 : vector<16x32xf32>, vector<16x32xf32>, vector<16x32xf32>, vector<16x32xf32> -> vector<64x32xf32>
    %51 = arith.mulf %50, %0 : vector<64x32xf32>
    %52 = arith.truncf %51 : vector<64x32xf32> to vector<64x32xbf16>
    %53 = arith.truncf %43 : vector<16x32xf32> to vector<16x32xbf16>
    %cst_36 = arith.constant dense<0.000000e+00> : vector<64x16xf32>
    %54 = tpu.matmul %52, %53, %cst_36 {dimension_numbers = #tpu.dot_dimension_numbers<[1], [1], [0], [0], [0, 0, 1, 0], [], []>} : vector<64x32xbf16>, vector<16x32xbf16>, vector<64x16xf32> -> vector<64x16xf32>
    %cst_37 = arith.constant 0.353553385 : f32
    %55 = vector.broadcast %cst_37 : f32 to vector<64x16xf32>
    %56 = arith.mulf %54, %55 : vector<64x16xf32>
    %57 = arith.addf %56, %1 : vector<64x16xf32>
    %58 = math.exp %57 : vector<64x16xf32>
    %cst_38 = arith.constant dense<0.000000e+00> : vector<64xf32>
    %59 = vector.multi_reduction <add>, %58, %cst_38 [1] : vector<64x16xf32> to vector<64xf32>
    %60 = vector.shape_cast %59 : vector<64xf32> to vector<64x1xf32>
    %61 = tpu.reciprocal %60 : vector<64x1xf32> -> vector<64x1xf32>
    %62 = vector.broadcast %61 : vector<64x1xf32> to vector<64x16xf32>
    %63 = arith.mulf %58, %62 : vector<64x16xf32>
    %64 = arith.truncf %63 : vector<64x16xf32> to vector<64x16xbf16>
    %65 = arith.truncf %49 : vector<16x32xf32> to vector<16x32xbf16>
    %cst_39 = arith.constant dense<0.000000e+00> : vector<64x32xf32>
    %66 = tpu.matmul %64, %65, %cst_39 {dimension_numbers = #tpu.dot_dimension_numbers<[1], [0], [0], [1], [0, 0, 1, 1], [], []>} : vector<64x16xbf16>, vector<16x32xbf16>, vector<64x32xf32> -> vector<64x32xf32>
    %67 = arith.mulf %66, %0 : vector<64x32xf32>
    %68 = vector.extract_strided_slice %67 {offsets = [0, 0], sizes = [16, 32], strides = [1, 1]} : vector<64x32xf32> to vector<16x32xf32>
    %69 = vector.extract_strided_slice %67 {offsets = [16, 0], sizes = [16, 32], strides = [1, 1]} : vector<64x32xf32> to vector<16x32xf32>
    %70 = arith.addf %68, %69 : vector<16x32xf32>
    %71 = vector.extract_strided_slice %67 {offsets = [32, 0], sizes = [16, 32], strides = [1, 1]} : vector<64x32xf32> to vector<16x32xf32>
    %72 = arith.addf %70, %71 : vector<16x32xf32>
    %73 = vector.extract_strided_slice %67 {offsets = [48, 0], sizes = [16, 32], strides = [1, 1]} : vector<64x32xf32> to vector<16x32xf32>
    %74 = arith.addf %72, %73 : vector<16x32xf32>
    %75 = arith.truncf %74 : vector<16x32xf32> to vector<16x32xbf16>
    %c0_40 = arith.constant 0 : index
    %c0_41 = arith.constant 0 : index
    %c0_42 = arith.constant 0 : index
    %76 = vector.load %arg13[%c0_40, %c0_41, %c0_42] : memref<2x32x32xbf16, #tpu.memory_space<vmem>>, vector<1x32x32xbf16>
    %77 = vector.shape_cast %76 : vector<1x32x32xbf16> to vector<32x32xbf16>
    %cst_43 = arith.constant dense<0.000000e+00> : vector<16x32xf32>
    %78 = tpu.matmul %75, %77, %cst_43 {dimension_numbers = #tpu.dot_dimension_numbers<[1], [0], [0], [1], [0, 0, 1, 1], [], []>} : vector<16x32xbf16>, vector<32x32xbf16>, vector<16x32xf32> -> vector<16x32xf32>
    %79 = arith.addf %6, %78 : vector<16x32xf32>
    %c0_44 = arith.constant 0 : index
    %c0_45 = arith.constant 0 : index
    %80 = vector.load %arg14[%c0_44, %c0_45] : memref<2x32xf32, #tpu.memory_space<vmem>>, vector<1x32xf32>
    %81 = vector.broadcast %80 : vector<1x32xf32> to vector<16x32xf32>
    %82 = arith.addf %79, %81 : vector<16x32xf32>
    %c0_46 = arith.constant 0 : index
    %c0_47 = arith.constant 0 : index
    %83 = vector.load %arg15[%c0_46, %c0_47] : memref<2x32xf32, #tpu.memory_space<vmem>>, vector<1x32xf32>
    %c0_48 = arith.constant 0 : index
    %c0_49 = arith.constant 0 : index
    %84 = vector.load %arg16[%c0_48, %c0_49] : memref<2x32xf32, #tpu.memory_space<vmem>>, vector<1x32xf32>
    %cst_50 = arith.constant dense<0.000000e+00> : vector<16xf32>
    %85 = vector.multi_reduction <add>, %82, %cst_50 [1] : vector<16x32xf32> to vector<16xf32>
    %86 = vector.shape_cast %85 : vector<16xf32> to vector<16x1xf32>
    %cst_51 = arith.constant 3.200000e+01 : f32
    %87 = vector.broadcast %cst_51 : f32 to vector<16x1xf32>
    %88 = arith.divf %86, %87 : vector<16x1xf32>
    %89 = vector.broadcast %88 : vector<16x1xf32> to vector<16x32xf32>
    %90 = arith.subf %82, %89 : vector<16x32xf32>
    %91 = arith.mulf %90, %90 : vector<16x32xf32>
    %cst_52 = arith.constant dense<0.000000e+00> : vector<16xf32>
    %92 = vector.multi_reduction <add>, %91, %cst_52 [1] : vector<16x32xf32> to vector<16xf32>
    %93 = vector.shape_cast %92 : vector<16xf32> to vector<16x1xf32>
    %cst_53 = arith.constant 3.200000e+01 : f32
    %94 = vector.broadcast %cst_53 : f32 to vector<16x1xf32>
    %95 = arith.divf %93, %94 : vector<16x1xf32>
    %96 = vector.broadcast %88 : vector<16x1xf32> to vector<16x32xf32>
    %97 = arith.subf %82, %96 : vector<16x32xf32>
    %cst_54 = arith.constant 9.99999974E-6 : f32
    %98 = vector.broadcast %cst_54 : f32 to vector<16x1xf32>
    %99 = arith.addf %95, %98 : vector<16x1xf32>
    %100 = math.rsqrt %99 : vector<16x1xf32>
    %101 = vector.broadcast %100 : vector<16x1xf32> to vector<16x32xf32>
    %102 = arith.mulf %97, %101 : vector<16x32xf32>
    %103 = vector.broadcast %83 : vector<1x32xf32> to vector<16x32xf32>
    %104 = arith.mulf %102, %103 : vector<16x32xf32>
    %105 = vector.broadcast %84 : vector<1x32xf32> to vector<16x32xf32>
    %106 = arith.addf %104, %105 : vector<16x32xf32>
    %107 = arith.truncf %106 : vector<16x32xf32> to vector<16x32xbf16>
    %c0_55 = arith.constant 0 : index
    %c0_56 = arith.constant 0 : index
    %c0_57 = arith.constant 0 : index
    %108 = vector.load %arg17[%c0_55, %c0_56, %c0_57] : memref<2x32x128xbf16, #tpu.memory_space<vmem>>, vector<1x32x128xbf16>
    %109 = vector.shape_cast %108 : vector<1x32x128xbf16> to vector<32x128xbf16>
    %cst_58 = arith.constant dense<0.000000e+00> : vector<16x128xf32>
    %110 = tpu.matmul %107, %109, %cst_58 {dimension_numbers = #tpu.dot_dimension_numbers<[1], [0], [0], [1], [0, 0, 1, 1], [], []>} : vector<16x32xbf16>, vector<32x128xbf16>, vector<16x128xf32> -> vector<16x128xf32>
    %c0_59 = arith.constant 0 : index
    %c0_60 = arith.constant 0 : index
    %111 = vector.load %arg18[%c0_59, %c0_60] : memref<2x128xf32, #tpu.memory_space<vmem>>, vector<1x128xf32>
    %112 = vector.broadcast %111 : vector<1x128xf32> to vector<16x128xf32>
    %113 = arith.addf %110, %112 : vector<16x128xf32>
    %cst_61 = arith.constant 5.000000e-01 : f32
    %114 = vector.broadcast %cst_61 : f32 to vector<16x128xf32>
    %115 = arith.mulf %114, %113 : vector<16x128xf32>
    %cst_62 = arith.constant 0.707106769 : f32
    %116 = vector.broadcast %cst_62 : f32 to vector<16x128xf32>
    %117 = arith.mulf %113, %116 : vector<16x128xf32>
    %118 = math.erf %117 : vector<16x128xf32>
    %cst_63 = arith.constant 1.000000e+00 : f32
    %119 = vector.broadcast %cst_63 : f32 to vector<16x128xf32>
    %120 = arith.addf %119, %118 : vector<16x128xf32>
    %121 = arith.mulf %115, %120 : vector<16x128xf32>
    %122 = arith.truncf %121 : vector<16x128xf32> to vector<16x128xbf16>
    %c0_64 = arith.constant 0 : index
    %c0_65 = arith.constant 0 : index
    %c0_66 = arith.constant 0 : index
    %123 = vector.load %arg19[%c0_64, %c0_65, %c0_66] : memref<2x128x32xbf16, #tpu.memory_space<vmem>>, vector<1x128x32xbf16>
    %124 = vector.shape_cast %123 : vector<1x128x32xbf16> to vector<128x32xbf16>
    %cst_67 = arith.constant dense<0.000000e+00> : vector<16x32xf32>
    %125 = tpu.matmul %122, %124, %cst_67 {dimension_numbers = #tpu.dot_dimension_numbers<[1], [0], [0], [1], [0, 0, 1, 1], [], []>} : vector<16x128xbf16>, vector<128x32xbf16>, vector<16x32xf32> -> vector<16x32xf32>
    %126 = arith.addf %82, %125 : vector<16x32xf32>
    %c0_68 = arith.constant 0 : index
    %c0_69 = arith.constant 0 : index
    %127 = vector.load %arg20[%c0_68, %c0_69] : memref<2x32xf32, #tpu.memory_space<vmem>>, vector<1x32xf32>
    %128 = vector.broadcast %127 : vector<1x32xf32> to vector<16x32xf32>
    %129 = arith.addf %126, %128 : vector<16x32xf32>
    %c1 = arith.constant 1 : index
    %c0_70 = arith.constant 0 : index
    %130 = vector.load %arg5[%c1, %c0_70] : memref<2x32xf32, #tpu.memory_space<vmem>>, vector<1x32xf32>
    %c1_71 = arith.constant 1 : index
    %c0_72 = arith.constant 0 : index
    %131 = vector.load %arg6[%c1_71, %c0_72] : memref<2x32xf32, #tpu.memory_space<vmem>>, vector<1x32xf32>
    %cst_73 = arith.constant dense<0.000000e+00> : vector<16xf32>
    %132 = vector.multi_reduction <add>, %129, %cst_73 [1] : vector<16x32xf32> to vector<16xf32>
    %133 = vector.shape_cast %132 : vector<16xf32> to vector<16x1xf32>
    %cst_74 = arith.constant 3.200000e+01 : f32
    %134 = vector.broadcast %cst_74 : f32 to vector<16x1xf32>
    %135 = arith.divf %133, %134 : vector<16x1xf32>
    %136 = vector.broadcast %135 : vector<16x1xf32> to vector<16x32xf32>
    %137 = arith.subf %129, %136 : vector<16x32xf32>
    %138 = arith.mulf %137, %137 : vector<16x32xf32>
    %cst_75 = arith.constant dense<0.000000e+00> : vector<16xf32>
    %139 = vector.multi_reduction <add>, %138, %cst_75 [1] : vector<16x32xf32> to vector<16xf32>
    %140 = vector.shape_cast %139 : vector<16xf32> to vector<16x1xf32>
    %cst_76 = arith.constant 3.200000e+01 : f32
    %141 = vector.broadcast %cst_76 : f32 to vector<16x1xf32>
    %142 = arith.divf %140, %141 : vector<16x1xf32>
    %143 = vector.broadcast %135 : vector<16x1xf32> to vector<16x32xf32>
    %144 = arith.subf %129, %143 : vector<16x32xf32>
    %cst_77 = arith.constant 9.99999974E-6 : f32
    %145 = vector.broadcast %cst_77 : f32 to vector<16x1xf32>
    %146 = arith.addf %142, %145 : vector<16x1xf32>
    %147 = math.rsqrt %146 : vector<16x1xf32>
    %148 = vector.broadcast %147 : vector<16x1xf32> to vector<16x32xf32>
    %149 = arith.mulf %144, %148 : vector<16x32xf32>
    %150 = vector.broadcast %130 : vector<1x32xf32> to vector<16x32xf32>
    %151 = arith.mulf %149, %150 : vector<16x32xf32>
    %152 = vector.broadcast %131 : vector<1x32xf32> to vector<16x32xf32>
    %153 = arith.addf %151, %152 : vector<16x32xf32>
    %154 = arith.truncf %153 : vector<16x32xf32> to vector<16x32xbf16>
    %c1_78 = arith.constant 1 : index
    %c0_79 = arith.constant 0 : index
    %c0_80 = arith.constant 0 : index
    %155 = vector.load %arg7[%c1_78, %c0_79, %c0_80] : memref<2x32x32xbf16, #tpu.memory_space<vmem>>, vector<1x32x32xbf16>
    %156 = vector.shape_cast %155 : vector<1x32x32xbf16> to vector<32x32xbf16>
    %cst_81 = arith.constant dense<0.000000e+00> : vector<16x32xf32>
    %157 = tpu.matmul %154, %156, %cst_81 {dimension_numbers = #tpu.dot_dimension_numbers<[1], [0], [0], [1], [0, 0, 1, 1], [], []>} : vector<16x32xbf16>, vector<32x32xbf16>, vector<16x32xf32> -> vector<16x32xf32>
    %c1_82 = arith.constant 1 : index
    %c0_83 = arith.constant 0 : index
    %158 = vector.load %arg10[%c1_82, %c0_83] : memref<2x32xf32, #tpu.memory_space<vmem>>, vector<1x32xf32>
    %159 = vector.broadcast %158 : vector<1x32xf32> to vector<16x32xf32>
    %160 = arith.addf %157, %159 : vector<16x32xf32>
    %c1_84 = arith.constant 1 : index
    %c0_85 = arith.constant 0 : index
    %c0_86 = arith.constant 0 : index
    %161 = vector.load %arg8[%c1_84, %c0_85, %c0_86] : memref<2x32x32xbf16, #tpu.memory_space<vmem>>, vector<1x32x32xbf16>
    %162 = vector.shape_cast %161 : vector<1x32x32xbf16> to vector<32x32xbf16>
    %cst_87 = arith.constant dense<0.000000e+00> : vector<16x32xf32>
    %163 = tpu.matmul %154, %162, %cst_87 {dimension_numbers = #tpu.dot_dimension_numbers<[1], [0], [0], [1], [0, 0, 1, 1], [], []>} : vector<16x32xbf16>, vector<32x32xbf16>, vector<16x32xf32> -> vector<16x32xf32>
    %c1_88 = arith.constant 1 : index
    %c0_89 = arith.constant 0 : index
    %164 = vector.load %arg11[%c1_88, %c0_89] : memref<2x32xf32, #tpu.memory_space<vmem>>, vector<1x32xf32>
    %165 = vector.broadcast %164 : vector<1x32xf32> to vector<16x32xf32>
    %166 = arith.addf %163, %165 : vector<16x32xf32>
    %c1_90 = arith.constant 1 : index
    %c0_91 = arith.constant 0 : index
    %c0_92 = arith.constant 0 : index
    %167 = vector.load %arg9[%c1_90, %c0_91, %c0_92] : memref<2x32x32xbf16, #tpu.memory_space<vmem>>, vector<1x32x32xbf16>
    %168 = vector.shape_cast %167 : vector<1x32x32xbf16> to vector<32x32xbf16>
    %cst_93 = arith.constant dense<0.000000e+00> : vector<16x32xf32>
    %169 = tpu.matmul %154, %168, %cst_93 {dimension_numbers = #tpu.dot_dimension_numbers<[1], [0], [0], [1], [0, 0, 1, 1], [], []>} : vector<16x32xbf16>, vector<32x32xbf16>, vector<16x32xf32> -> vector<16x32xf32>
    %c1_94 = arith.constant 1 : index
    %c0_95 = arith.constant 0 : index
    %170 = vector.load %arg12[%c1_94, %c0_95] : memref<2x32xf32, #tpu.memory_space<vmem>>, vector<1x32xf32>
    %171 = vector.broadcast %170 : vector<1x32xf32> to vector<16x32xf32>
    %172 = arith.addf %169, %171 : vector<16x32xf32>
    %173 = tpu.concatenate %160, %160, %160, %160 in 0 : vector<16x32xf32>, vector<16x32xf32>, vector<16x32xf32>, vector<16x32xf32> -> vector<64x32xf32>
    %174 = arith.mulf %173, %0 : vector<64x32xf32>
    %175 = arith.truncf %174 : vector<64x32xf32> to vector<64x32xbf16>
    %176 = arith.truncf %166 : vector<16x32xf32> to vector<16x32xbf16>
    %cst_96 = arith.constant dense<0.000000e+00> : vector<64x16xf32>
    %177 = tpu.matmul %175, %176, %cst_96 {dimension_numbers = #tpu.dot_dimension_numbers<[1], [1], [0], [0], [0, 0, 1, 0], [], []>} : vector<64x32xbf16>, vector<16x32xbf16>, vector<64x16xf32> -> vector<64x16xf32>
    %cst_97 = arith.constant 0.353553385 : f32
    %178 = vector.broadcast %cst_97 : f32 to vector<64x16xf32>
    %179 = arith.mulf %177, %178 : vector<64x16xf32>
    %180 = arith.addf %179, %1 : vector<64x16xf32>
    %181 = math.exp %180 : vector<64x16xf32>
    %cst_98 = arith.constant dense<0.000000e+00> : vector<64xf32>
    %182 = vector.multi_reduction <add>, %181, %cst_98 [1] : vector<64x16xf32> to vector<64xf32>
    %183 = vector.shape_cast %182 : vector<64xf32> to vector<64x1xf32>
    %184 = tpu.reciprocal %183 : vector<64x1xf32> -> vector<64x1xf32>
    %185 = vector.broadcast %184 : vector<64x1xf32> to vector<64x16xf32>
    %186 = arith.mulf %181, %185 : vector<64x16xf32>
    %187 = arith.truncf %186 : vector<64x16xf32> to vector<64x16xbf16>
    %188 = arith.truncf %172 : vector<16x32xf32> to vector<16x32xbf16>
    %cst_99 = arith.constant dense<0.000000e+00> : vector<64x32xf32>
    %189 = tpu.matmul %187, %188, %cst_99 {dimension_numbers = #tpu.dot_dimension_numbers<[1], [0], [0], [1], [0, 0, 1, 1], [], []>} : vector<64x16xbf16>, vector<16x32xbf16>, vector<64x32xf32> -> vector<64x32xf32>
    %190 = arith.mulf %189, %0 : vector<64x32xf32>
    %191 = vector.extract_strided_slice %190 {offsets = [0, 0], sizes = [16, 32], strides = [1, 1]} : vector<64x32xf32> to vector<16x32xf32>
    %192 = vector.extract_strided_slice %190 {offsets = [16, 0], sizes = [16, 32], strides = [1, 1]} : vector<64x32xf32> to vector<16x32xf32>
    %193 = arith.addf %191, %192 : vector<16x32xf32>
    %194 = vector.extract_strided_slice %190 {offsets = [32, 0], sizes = [16, 32], strides = [1, 1]} : vector<64x32xf32> to vector<16x32xf32>
    %195 = arith.addf %193, %194 : vector<16x32xf32>
    %196 = vector.extract_strided_slice %190 {offsets = [48, 0], sizes = [16, 32], strides = [1, 1]} : vector<64x32xf32> to vector<16x32xf32>
    %197 = arith.addf %195, %196 : vector<16x32xf32>
    %198 = arith.truncf %197 : vector<16x32xf32> to vector<16x32xbf16>
    %c1_100 = arith.constant 1 : index
    %c0_101 = arith.constant 0 : index
    %c0_102 = arith.constant 0 : index
    %199 = vector.load %arg13[%c1_100, %c0_101, %c0_102] : memref<2x32x32xbf16, #tpu.memory_space<vmem>>, vector<1x32x32xbf16>
    %200 = vector.shape_cast %199 : vector<1x32x32xbf16> to vector<32x32xbf16>
    %cst_103 = arith.constant dense<0.000000e+00> : vector<16x32xf32>
    %201 = tpu.matmul %198, %200, %cst_103 {dimension_numbers = #tpu.dot_dimension_numbers<[1], [0], [0], [1], [0, 0, 1, 1], [], []>} : vector<16x32xbf16>, vector<32x32xbf16>, vector<16x32xf32> -> vector<16x32xf32>
    %202 = arith.addf %129, %201 : vector<16x32xf32>
    %c1_104 = arith.constant 1 : index
    %c0_105 = arith.constant 0 : index
    %203 = vector.load %arg14[%c1_104, %c0_105] : memref<2x32xf32, #tpu.memory_space<vmem>>, vector<1x32xf32>
    %204 = vector.broadcast %203 : vector<1x32xf32> to vector<16x32xf32>
    %205 = arith.addf %202, %204 : vector<16x32xf32>
    %c1_106 = arith.constant 1 : index
    %c0_107 = arith.constant 0 : index
    %206 = vector.load %arg15[%c1_106, %c0_107] : memref<2x32xf32, #tpu.memory_space<vmem>>, vector<1x32xf32>
    %c1_108 = arith.constant 1 : index
    %c0_109 = arith.constant 0 : index
    %207 = vector.load %arg16[%c1_108, %c0_109] : memref<2x32xf32, #tpu.memory_space<vmem>>, vector<1x32xf32>
    %cst_110 = arith.constant dense<0.000000e+00> : vector<16xf32>
    %208 = vector.multi_reduction <add>, %205, %cst_110 [1] : vector<16x32xf32> to vector<16xf32>
    %209 = vector.shape_cast %208 : vector<16xf32> to vector<16x1xf32>
    %cst_111 = arith.constant 3.200000e+01 : f32
    %210 = vector.broadcast %cst_111 : f32 to vector<16x1xf32>
    %211 = arith.divf %209, %210 : vector<16x1xf32>
    %212 = vector.broadcast %211 : vector<16x1xf32> to vector<16x32xf32>
    %213 = arith.subf %205, %212 : vector<16x32xf32>
    %214 = arith.mulf %213, %213 : vector<16x32xf32>
    %cst_112 = arith.constant dense<0.000000e+00> : vector<16xf32>
    %215 = vector.multi_reduction <add>, %214, %cst_112 [1] : vector<16x32xf32> to vector<16xf32>
    %216 = vector.shape_cast %215 : vector<16xf32> to vector<16x1xf32>
    %cst_113 = arith.constant 3.200000e+01 : f32
    %217 = vector.broadcast %cst_113 : f32 to vector<16x1xf32>
    %218 = arith.divf %216, %217 : vector<16x1xf32>
    %219 = vector.broadcast %211 : vector<16x1xf32> to vector<16x32xf32>
    %220 = arith.subf %205, %219 : vector<16x32xf32>
    %cst_114 = arith.constant 9.99999974E-6 : f32
    %221 = vector.broadcast %cst_114 : f32 to vector<16x1xf32>
    %222 = arith.addf %218, %221 : vector<16x1xf32>
    %223 = math.rsqrt %222 : vector<16x1xf32>
    %224 = vector.broadcast %223 : vector<16x1xf32> to vector<16x32xf32>
    %225 = arith.mulf %220, %224 : vector<16x32xf32>
    %226 = vector.broadcast %206 : vector<1x32xf32> to vector<16x32xf32>
    %227 = arith.mulf %225, %226 : vector<16x32xf32>
    %228 = vector.broadcast %207 : vector<1x32xf32> to vector<16x32xf32>
    %229 = arith.addf %227, %228 : vector<16x32xf32>
    %230 = arith.truncf %229 : vector<16x32xf32> to vector<16x32xbf16>
    %c1_115 = arith.constant 1 : index
    %c0_116 = arith.constant 0 : index
    %c0_117 = arith.constant 0 : index
    %231 = vector.load %arg17[%c1_115, %c0_116, %c0_117] : memref<2x32x128xbf16, #tpu.memory_space<vmem>>, vector<1x32x128xbf16>
    %232 = vector.shape_cast %231 : vector<1x32x128xbf16> to vector<32x128xbf16>
    %cst_118 = arith.constant dense<0.000000e+00> : vector<16x128xf32>
    %233 = tpu.matmul %230, %232, %cst_118 {dimension_numbers = #tpu.dot_dimension_numbers<[1], [0], [0], [1], [0, 0, 1, 1], [], []>} : vector<16x32xbf16>, vector<32x128xbf16>, vector<16x128xf32> -> vector<16x128xf32>
    %c1_119 = arith.constant 1 : index
    %c0_120 = arith.constant 0 : index
    %234 = vector.load %arg18[%c1_119, %c0_120] : memref<2x128xf32, #tpu.memory_space<vmem>>, vector<1x128xf32>
    %235 = vector.broadcast %234 : vector<1x128xf32> to vector<16x128xf32>
    %236 = arith.addf %233, %235 : vector<16x128xf32>
    %cst_121 = arith.constant 5.000000e-01 : f32
    %237 = vector.broadcast %cst_121 : f32 to vector<16x128xf32>
    %238 = arith.mulf %237, %236 : vector<16x128xf32>
    %cst_122 = arith.constant 0.707106769 : f32
    %239 = vector.broadcast %cst_122 : f32 to vector<16x128xf32>
    %240 = arith.mulf %236, %239 : vector<16x128xf32>
    %241 = math.erf %240 : vector<16x128xf32>
    %cst_123 = arith.constant 1.000000e+00 : f32
    %242 = vector.broadcast %cst_123 : f32 to vector<16x128xf32>
    %243 = arith.addf %242, %241 : vector<16x128xf32>
    %244 = arith.mulf %238, %243 : vector<16x128xf32>
    %245 = arith.truncf %244 : vector<16x128xf32> to vector<16x128xbf16>
    %c1_124 = arith.constant 1 : index
    %c0_125 = arith.constant 0 : index
    %c0_126 = arith.constant 0 : index
    %246 = vector.load %arg19[%c1_124, %c0_125, %c0_126] : memref<2x128x32xbf16, #tpu.memory_space<vmem>>, vector<1x128x32xbf16>
    %247 = vector.shape_cast %246 : vector<1x128x32xbf16> to vector<128x32xbf16>
    %cst_127 = arith.constant dense<0.000000e+00> : vector<16x32xf32>
    %248 = tpu.matmul %245, %247, %cst_127 {dimension_numbers = #tpu.dot_dimension_numbers<[1], [0], [0], [1], [0, 0, 1, 1], [], []>} : vector<16x128xbf16>, vector<128x32xbf16>, vector<16x32xf32> -> vector<16x32xf32>
    %249 = arith.addf %205, %248 : vector<16x32xf32>
    %c1_128 = arith.constant 1 : index
    %c0_129 = arith.constant 0 : index
    %250 = vector.load %arg20[%c1_128, %c0_129] : memref<2x32xf32, #tpu.memory_space<vmem>>, vector<1x32xf32>
    %251 = vector.broadcast %250 : vector<1x32xf32> to vector<16x32xf32>
    %252 = arith.addf %249, %251 : vector<16x32xf32>
    %253 = arith.truncf %252 : vector<16x32xf32> to vector<16x32xbf16>
    %c0_130 = arith.constant 0 : index
    %c0_131 = arith.constant 0 : index
    %254 = vector.load %arg21[%c0_130, %c0_131] : memref<32x128xbf16, #tpu.memory_space<vmem>>, vector<32x128xbf16>
    %cst_132 = arith.constant dense<0.000000e+00> : vector<16x128xf32>
    %255 = tpu.matmul %253, %254, %cst_132 {dimension_numbers = #tpu.dot_dimension_numbers<[1], [0], [0], [1], [0, 0, 1, 1], [], []>} : vector<16x32xbf16>, vector<32x128xbf16>, vector<16x128xf32> -> vector<16x128xf32>
    %c0_133 = arith.constant 0 : index
    %c0_134 = arith.constant 0 : index
    %256 = vector.load %arg22[%c0_133, %c0_134] : memref<1x128xf32, #tpu.memory_space<vmem>>, vector<1x128xf32>
    %257 = vector.broadcast %256 : vector<1x128xf32> to vector<16x128xf32>
    %258 = arith.addf %255, %257 : vector<16x128xf32>
    %259 = arith.negf %258 : vector<16x128xf32>
    %260 = math.exp %259 : vector<16x128xf32>
    %cst_135 = arith.constant 1.000000e+00 : f32
    %261 = vector.broadcast %cst_135 : f32 to vector<16x128xf32>
    %262 = arith.addf %261, %260 : vector<16x128xf32>
    %263 = arith.divf %261, %262 : vector<16x128xf32>
    %c0_136 = arith.constant 0 : index
    %c0_137 = arith.constant 0 : index
    %264 = vector.load %arg23[%c0_136, %c0_137] : memref<16x128xf32, #tpu.memory_space<vmem>>, vector<16x128xf32>
    tpu.vector_store %arg23[%c0_136, %c0_137], %263 {strides = array<i32>} : memref<16x128xf32, #tpu.memory_space<vmem>>, vector<16x128xf32>,
    return
  }
}

</mosaic_0001>

<bundles_post_ra>
// kernel: mul.9
= control target key start
LH: loop header
LB: loop body
LE: loop exit
PB: predicated region body
PF: predicated region fallthrough
CT: control target
= control target key end

     0   :  { %vm7_vm0 = vcmask 523264   ;;  %vm13_vm1 = vcmask 1048064   ;;  %s39_s0 = inlined_call_operand.vmem [shape: f32[2,64], index: 0, kind: input, shape index: {}]   ;;  %s40_s1 = inlined_call_operand.vmem [shape: f32[128], index: 1, kind: output, shape index: {}]  }
   0x1   :  { %v4_v0 = vld [vmem:[%s39_s0] sm:$0x3]  ;;  %s22_s0 = smov 64  }
   0x2   :  { %5 = vst [vmem:[#allocation1] sm:$0x3] %v4_v0 }
   0x9   :  { %v10_v1 = vld [vmem:[#allocation1 + $0x1] sm:$0x1]   ;;  %v6_v2 = vld [vmem:[#allocation1] sm:$0x1]  }
   0xa   :  { %11 = vrot.lane.b32.xlu0 %v10_v1, %s22_s0  ;;  %8 = vst.msk [vmem:[#allocation0] sm:$0x1] %vm7_vm0, %v6_v2  }
  0x7c   :  { %v12_v3 = vpop.permute.xlu0 %11  }
  0x7d   :  { %14 = vst.msk [vmem:[#allocation0] sm:$0x1] %vm13_vm1, %v12_v3  }
  0x84   :  { %v18_v4 = vld [vmem:[#allocation0] sm:$0x1] }
  0x85   :  { %20 = vst [vmem:[%s40_s1] sm:$0x1] %v18_v4 }

// kernel: vit_forward.1
= control target key start
LH: loop header
LB: loop body
LE: loop exit
PB: predicated region body
PF: predicated region fallthrough
CT: control target
= control target key end

     0   :  { %v2441_v0 = vmov 0.0   ;;  %vm2442_vm0 = vmmov 0   ;;  %vm208_vm1 = vcmask 261120   ;;  %vm563_vm2 = vcmask 130048   ;;  %s3100_s3 = inlined_call_operand.vmem [shape: bf16[128,32], index: 3, kind: input, shape index: {}]   ;;  %s3101_s0 = inlined_call_operand.vmem [shape: bf16[16,128], index: 0, kind: input, shape index: {}]   ;;  %s3102_s4 = inlined_call_operand.vmem [shape: f32[16,32], index: 4, kind: input, shape index: {}]   ;;  %s3103_s7 = inlined_call_operand.vmem [shape: bf16[2,32,32], index: 7, kind: input, shape index: {}]   ;;  %s3104_s8 = inlined_call_operand.vmem [shape: bf16[2,32,32], index: 8, kind: input, shape index: {}]   ;;  %s3105_s9 = inlined_call_operand.vmem [shape: bf16[2,32,32], index: 9, kind: input, shape index: {}]   ;;  %s3106_s5 = inlined_call_operand.vmem [shape: f32[2,32], index: 5, kind: input, shape index: {}]   ;;  %s3107_s6 = inlined_call_operand.vmem [shape: f32[2,32], index: 6, kind: input, shape index: {}]   ;;  %s3108_s10 = inlined_call_operand.vmem [shape: f32[2,32], index: 10, kind: input, shape index: {}]   ;;  %s3109_s1 = inlined_call_operand.vmem [shape: f32[64,32], index: 1, kind: input, shape index: {}]   ;;  %s3110_s11 = inlined_call_operand.vmem [shape: f32[2,32], index: 11, kind: input, shape index: {}]   ;;  %s3111_s12 = inlined_call_operand.vmem [shape: f32[2,32], index: 12, kind: input, shape index: {}]   ;;  %s3112_s2 = inlined_call_operand.vmem [shape: f32[64,16], index: 2, kind: input, shape index: {}]   ;;  %s3113_s13 = inlined_call_operand.vmem [shape: bf16[2,32,32], index: 13, kind: input, shape index: {}]   ;;  %s3114_s14 = inlined_call_operand.vmem [shape: f32[2,32], index: 14, kind: input, shape index: {}]   ;;  %s3115_s17 = inlined_call_operand.vmem [shape: bf16[2,32,128], index: 17, kind: input, shape index: {}]   ;;  %s3116_s19 = inlined_call_operand.vmem [shape: bf16[2,128,32], index: 19, kind: input, shape index: {}]   ;;  %s3117_s15 = inlined_call_operand.vmem [shape: f32[2,32], index: 15, kind: input, shape index: {}]   ;;  %s3118_s16 = inlined_call_operand.vmem [shape: f32[2,32], index: 16, kind: input, shape index: {}]   ;;  %s3119_s18 = inlined_call_operand.vmem [shape: f32[2,128], index: 18, kind: input, shape index: {}]   ;;  %s3120_s20 = inlined_call_operand.vmem [shape: f32[2,32], index: 20, kind: input, shape index: {}]   ;;  %s3121_s21 = inlined_call_operand.vmem [shape: bf16[32,128], index: 21, kind: input, shape index: {}]   ;;  %s3122_s22 = inlined_call_operand.vmem [shape: f32[1,128], index: 22, kind: input, shape index: {}]   ;;  %s3123_s23 = inlined_call_operand.vmem [shape: f32[16,128], index: 23, kind: output, shape index: {}]  }
   0x1   :  { %3131 = sst [smem:[#allocation2_spill]] %s3100_s3  ;;  %2098 = vmatprep.subr.bf16.mxu0 %v2441_v0  ;;  %2114 = vmatprep.mubr.msk.bf16.mxu0 %vm2442_vm0, %v2441_v0  ;;  %v1896_v53 = vld [vmem:[%s3108_s10] ss:$0 sm:$0xff]  ;;  %v2668_v56 = vld [vmem:[%s3109_s1 + $0x10] sm:$0xff]  ;;  %v2683_v61 = vld [vmem:[%s3109_s1 + $0x8] sm:$0xff] }
   0x2   :  { %3132 = sst [smem:[#allocation3_spill]] %s3101_s0  ;;  %s3139_s24 = sld [smem:[#allocation2_spill]]  ;;  %2118 = vmatprep.subr.bf16.mxu1 %v2441_v0  ;;  %2122 = vmatprep.mubr.msk.bf16.mxu1 %vm2442_vm0, %v2441_v0  ;;  %v2663_v55 = vld [vmem:[%s3109_s1] sm:$0xff]  ;;  %v2678_v60 = vld [vmem:[%s3109_s1 + $0x30] sm:$0xff]  ;;  %v2688_v63 = vld [vmem:[%s3109_s1 + $0x18] sm:$0xff] }
   0x3   :  { %3133 = sst [smem:[#allocation4_spill]] %s3102_s4  ;;  %s3140_s0 = sld [smem:[#allocation3_spill]]  ;;  %v2673_v59 = vld [vmem:[%s3109_s1 + $0x20] sm:$0xff] }
   0x4   :  { %3134 = sst [smem:[#allocation5_spill]] %s3103_s7 }
   0x5   :  { %3135 = sst [smem:[#allocation6_spill]] %s3104_s8  ;;  %s3142_s29 = sld [smem:[#allocation5_spill]] }
   0x6   :  { %3136 = sst [smem:[#allocation7_spill]] %s3105_s9  ;;  %s3145_s27 = sld [smem:[#allocation6_spill]] }
   0x7   :  { %3137 = sst [smem:[#allocation8_spill]] %s3106_s5  ;;  %s3141_s5 = sld [smem:[#allocation4_spill]] }
   0x8   :  { %3138 = sst [smem:[#allocation9_spill]] %s3107_s6  ;;  %v2290_v1 = vld [vmem:[%s3139_s24] sm:$0xff]   ;;  %v2291_v2 = vld [vmem:[%s3139_s24 + $0x8] sm:$0xff]   ;;  %v2292_v3 = vld [vmem:[%s3139_s24 + $0x10] sm:$0xff]   ;;  %s3143_s25 = sld [smem:[#allocation8_spill]] }
   0x9   :  { %2099 = vmatpush3.bf16.msra.mxu0 %v2290_v1  ;;  %v2293_v4 = vld [vmem:[%s3139_s24 + $0x18] sm:$0xff]   ;;  %v2294_v5 = vld [vmem:[%s3139_s24 + $0x20] sm:$0xff]   ;;  %v2295_v6 = vld [vmem:[%s3139_s24 + $0x28] sm:$0xff]   ;;  %s3144_s26 = sld [smem:[#allocation9_spill]]  ;;  %s3146_s3 = sld [smem:[#allocation7_spill]] }
   0xa   :  { %2100 = vmatprep.subr.bf16.mxu0 %v2441_v0  ;;  %v2296_v7 = vld [vmem:[%s3139_s24 + $0x30] sm:$0xff]   ;;  %v2297_v8 = vld [vmem:[%s3139_s24 + $0x38] sm:$0xff]   ;;  %v2298_v9 = vld [vmem:[%s3140_s0] sm:$0xff]  }
   0xb   :  { %v2299_v30 = vld [vmem:[%s3142_s29] sm:$0xff]   ;;  %v2300_v31 = vld [vmem:[%s3142_s29 + $0x8] sm:$0xff]  }
   0xc   :  { %2119 = vmatpush3.bf16.msra.mxu1 %v2299_v30  ;;  %v2301_v48 = vld [vmem:[%s3145_s27] sm:$0xff]   ;;  %v2302_v50 = vld [vmem:[%s3145_s27 + $0x8] sm:$0xff]  }
   0xd   :  { %2101 = vmatpush3.bf16.msra.mxu0 %v2291_v2  ;;  %v109_v10 = vld [vmem:[%s3141_s5] sm:$0xff]  ;;  %v110_v12 = vld [vmem:[%s3141_s5 + $0x8] sm:$0xff]  ;;  %2120 = vmatprep.subr.bf16.mxu1 %v2441_v0  ;;  %v2698_v2 = vld [vmem:[%s3109_s1 + $0x38] sm:$0xff] }
   0xe   :  { %2102 = vmatprep.subr.bf16.mxu0 %v2441_v0  ;;  %v1894_v40 = vld [vmem:[%s3143_s25] ss:$0 sm:$0xff]  ;;  %v2693_v1 = vld [vmem:[%s3109_s1 + $0x28] sm:$0xff] }
   0xf   :  { %v1895_v44 = vld [vmem:[%s3144_s26] ss:$0 sm:$0xff]  ;;  %v2304_v52 = vld [vmem:[%s3146_s3 + $0x8] sm:$0xff]  }
  0x10   :  { %2121 = vmatpush3.bf16.msra.mxu1 %v2300_v31  ;;  %v2303_v51 = vld [vmem:[%s3146_s3] sm:$0xff]  }
  0x11   :  { %2103 = vmatpush3.bf16.msra.mxu0 %v2292_v3  ;;  %2126 = vmatprep.subr.bf16.mxu1 %v2441_v0 }
  0x12   :  { %2104 = vmatprep.subr.bf16.mxu0 %v2441_v0 }
  0x15   :  { %2105 = vmatpush3.bf16.msra.mxu0 %v2293_v4 }
  0x16   :  { %2106 = vmatprep.subr.bf16.mxu0 %v2441_v0 }
  0x19   :  { %2107 = vmatpush3.bf16.msra.mxu0 %v2294_v5 }
  0x1a   :  { %2108 = vmatprep.subr.bf16.mxu0 %v2441_v0 }
  0x1d   :  { %2109 = vmatpush3.bf16.msra.mxu0 %v2295_v6 }
  0x1e   :  { %2110 = vmatprep.subr.bf16.mxu0 %v2441_v0 }
  0x21   :  { %2111 = vmatpush3.bf16.msra.mxu0 %v2296_v7 }
  0x22   :  { %2112 = vmatprep.subr.bf16.mxu0 %v2441_v0 }
  0x25   :  { %2113 = vmatpush3.bf16.msra.mxu0 %v2297_v8 }
  0x28   :  { %2115 = vmatmul.mubr.bf16.vlgmr.msra.gmra.mrb[0].mxu0 %v2298_v9 }
  0xfb   :  { %v199_v11 = vpop.f32.mrb[0].mxu0 }
  0xfc   :  { %v2609_v13 = vadd.f32 %v199_v11, %v109_v10  ;;  %v2116_v14 = vpop.f32.mrb[1].mxu0 }
  0xfd   :  { %v202_v15 = vpop.f32.mrb[2].mxu0 }
  0xfe   :  { %v2611_v16 = vadd.f32 %v202_v15, %v110_v12  ;;  %v2117_v17 = vpop.f32.mrb[3].mxu0  ;;  %v209_v18 = vsel %vm208_vm1, %v2609_v13, 0.0  ;;  %v1900_v15 = vld [vmem:[%s3110_s11] ss:$0 sm:$0xff] }
  0xff   :  { %210 = vadd.xlane.f32.xlu0 %v209_v18 }
 0x100   :  { %v212_v19 = vsel %vm208_vm1, %v2611_v16, 0.0 }
 0x103   :  { %213 = vadd.xlane.f32.xlu0 %v212_v19 }
 0x18c   :  { %v211_v20 = vpop.xlane.xlu0 %210 }
 0x18d   :  { %v216_v21 = vmul.f32 0.03125, %v211_v20 }
 0x18f   :  { %v218_v22 = vsub.f32 %v2609_v13, %v216_v21 }
 0x190   :  { %v214_v23 = vpop.xlane.xlu0 %213 }
 0x191   :  { %v217_v24 = vmul.f32 0.03125, %v214_v23  ;;  %v220_v25 = vmul.f32 %v218_v22, %v218_v22 }
 0x193   :  { %v219_v26 = vsub.f32 %v2611_v16, %v217_v24  ;;  %v222_v27 = vsel %vm208_vm1, %v220_v25, 0.0 }
 0x194   :  { %223 = vadd.xlane.f32.xlu1 %v222_v27 }
 0x195   :  { %v221_v28 = vmul.f32 %v219_v26, %v219_v26 }
 0x197   :  { %v225_v29 = vsel %vm208_vm1, %v221_v28, 0.0  ;;  %v1904_v28 = vld [vmem:[%s3111_s12] ss:$0 sm:$0xff] }
 0x198   :  { %226 = vadd.xlane.f32.xlu1 %v225_v29 }
 0x221   :  { %v224_v32 = vpop.xlane.xlu1 %223 }
 0x222   :  { %v228_v33 = vmul.f32 0.03125, %v224_v32 }
 0x224   :  { %v230_v34 = vadd.f32 1e-05, %v228_v33 }
 0x225   :  { %v227_v35 = vpop.xlane.xlu1 %226 }
 0x226   :  { %2337 = vrsqrt.f32 %v230_v34  ;;  %v229_v36 = vmul.f32 0.03125, %v227_v35 }
 0x228   :  { %v231_v37 = vadd.f32 1e-05, %v229_v36  ;;  %v2727_v36 = vld [vmem:[%s3112_s2 + $0x10] sm:$0xff] }
 0x22a   :  { %2339 = vrsqrt.f32 %v231_v37 }
 0x230   :  { %v2338_v38 = vpop.eup %2337 }
 0x231   :  { %v234_v39 = vmul.f32 %v2338_v38, %v218_v22 }
 0x233   :  { %v240_v43 = vmul.f32 %v1894_v40, %v234_v39  ;;  %v2732_v39 = vld [vmem:[%s3112_s2] sm:$0xff] }
 0x234   :  { %v2340_v41 = vpop.eup %2339 }
 0x235   :  { %v235_v42 = vmul.f32 %v2340_v41, %v219_v26  ;;  %v246_v46 = vadd.f32 %v1895_v44, %v240_v43 }
 0x237   :  { %v241_v45 = vmul.f32 %v1894_v40, %v235_v42  ;;  %v2737_v42 = vld [vmem:[%s3112_s2 + $0x18] sm:$0xff] }
 0x239   :  { %v247_v47 = vadd.f32 %v1895_v44, %v241_v45 }
 0x23b   :  { %v248_v49 = vpack.c.bf16 %v247_v47, %v246_v46  ;;  %v2743_v46 = vld [vmem:[%s3112_s2 + $0x8] sm:$0xff] }
 0x23d   :  { %2123 = vmatmul.mubr.msk.bf16.vlgmr.msra.gmra.mrb[0].mxu1 %vm208_vm1, %v248_v49 }
 0x23e   :  { %2127 = vmatpush3.bf16.msra.mxu1 %v2301_v48  ;;  %2130 = vmatprep.mubr.msk.bf16.mxu1 %vm2442_vm0, %v2441_v0 }
 0x23f   :  { %2128 = vmatprep.subr.bf16.mxu1 %v2441_v0 }
 0x242   :  { %2129 = vmatpush3.bf16.msra.mxu1 %v2302_v50 }
 0x243   :  { %2134 = vmatprep.subr.bf16.mxu1 %v2441_v0 }
 0x245   :  { %2131 = vmatmul.mubr.msk.bf16.vlgmr.msra.gmra.mrb[4].mxu1 %vm208_vm1, %v248_v49 }
 0x246   :  { %2135 = vmatpush3.bf16.msra.mxu1 %v2303_v51  ;;  %2138 = vmatprep.mubr.msk.bf16.mxu1 %vm2442_vm0, %v2441_v0 }
 0x247   :  { %2136 = vmatprep.subr.bf16.mxu1 %v2441_v0 }
 0x24a   :  { %2137 = vmatpush3.bf16.msra.mxu1 %v2304_v52 }
 0x24d   :  { %2139 = vmatmul.mubr.msk.bf16.vlgmr.msra.gmra.mrb[8].mxu1 %vm208_vm1, %v248_v49 }
 0x310   :  { %v307_v54 = vpop.f32.mrb[0].mxu1 }
 0x311   :  { %v308_v57 = vadd.f32 %v1896_v53, %v307_v54  ;;  %v2124_v58 = vpop.f32.mrb[1].mxu1 }
 0x312   :  { %v310_v62 = vpop.f32.mrb[2].mxu1  ;;  %v2751_v58 = vld [vmem:[%s3112_s2 + $0x30] sm:$0xff] }
 0x313   :  { %v2125_v3 = vpop.f32.mrb[3].mxu1  ;;  %v311_v4 = vadd.f32 %v1896_v53, %v310_v62  ;;  %v438_v5 = vmul.f32 %v308_v57, %v2663_v55  ;;  %v440_v6 = vmul.f32 %v308_v57, %v2668_v56  ;;  %v442_v7 = vmul.f32 %v308_v57, %v2673_v59 }
 0x314   :  { %v444_v8 = vmul.f32 %v308_v57, %v2678_v60 }
 0x315   :  { %v439_v9 = vmul.f32 %v311_v4, %v2683_v61  ;;  %v441_v10 = vmul.f32 %v311_v4, %v2688_v63  ;;  %v443_v11 = vmul.f32 %v311_v4, %v2693_v1  ;;  %v445_v12 = vmul.f32 %v311_v4, %v2698_v2  ;;  %v2756_v4 = vld [vmem:[%s3112_s2 + $0x20] sm:$0xff] }
 0x317   :  { %v447_v14 = vpack.c.bf16 %v441_v10, %v440_v6  ;;  %v446_v18 = vpack.c.bf16 %v439_v9, %v438_v5  ;;  %v448_v19 = vpack.c.bf16 %v443_v11, %v442_v7  ;;  %v449_v20 = vpack.c.bf16 %v445_v12, %v444_v8  ;;  %v2761_v7 = vld [vmem:[%s3112_s2 + $0x38] sm:$0xff]  ;;  %v2767_v11 = vld [vmem:[%s3112_s2 + $0x28] sm:$0xff] }
 0x318   :  { %v369_v17 = vpop.f32.mrb[4].mxu1 }
 0x319   :  { %v2132_v21 = vpop.f32.mrb[5].mxu1  ;;  %2144 = vmatprep.mubr.msk.bf16.mxu1 %vm208_vm1, %v446_v18  ;;  %v370_v23 = vadd.f32 %v1900_v15, %v369_v17 }
 0x31a   :  { %v372_v22 = vpop.f32.mrb[6].mxu1 }
 0x31b   :  { %v373_v24 = vadd.f32 %v1900_v15, %v372_v22  ;;  %v2133_v25 = vpop.f32.mrb[7].mxu1 }
 0x31d   :  { %v450_v26 = vpack.c.bf16 %v373_v24, %v370_v23 }
 0x31f   :  { %2286 = vmatprep.subr.msk.bf16.mxu1 %vm208_vm1, %v450_v26  ;;  %v464_v27 = vsel %vm208_vm1, %v450_v26, 0 }
 0x320   :  { %v431_v29 = vpop.f32.mrb[8].mxu1  ;;  %2143 = vmatpush3.bf16.xpose.msra.mxu1 %v464_v27 }
 0x321   :  { %v2140_v30 = vpop.f32.mrb[9].mxu1  ;;  %2162 = vmatprep.subr.bf16.mxu1 %v2441_v0  ;;  %v432_v32 = vadd.f32 %v1904_v28, %v431_v29 }
 0x322   :  { %v434_v31 = vpop.f32.mrb[10].mxu1 }
 0x323   :  { %v435_v33 = vadd.f32 %v1904_v28, %v434_v31  ;;  %v2141_v34 = vpop.f32.mrb[11].mxu1 }
 0x325   :  { %v608_v35 = vpack.c.bf16 %v435_v33, %v432_v32 }
 0x327   :  { %2145 = vmatmul.mubr.msk.bf16.vlgmr.msra.gmra.mrb[12].mxu1 %vm208_vm1, %v447_v14  ;;  %2152 = vmatprep.subr.bf16.mxu0 %v608_v35 }
 0x328   :  { %2148 = vmatprep.mubr.msk.bf16.mxu1 %vm208_vm1, %v448_v19  ;;  %2153 = vmatpush3.bf16.msra.mxu0 %v608_v35 }
 0x329   :  { %2170 = vmatprep.subr.bf16.mxu0 %v2441_v0 }
 0x32f   :  { %2149 = vmatmul.mubr.msk.bf16.gmra.mrb[16].mxu1 %vm208_vm1, %v449_v20 }
 0x330   :  { %2166 = vmatprep.mubr.msk.bf16.mxu1 %vm2442_vm0, %v2441_v0 }
 0x3fa   :  { %v2146_v37 = vpop.f32.mrb[12].mxu1 }
 0x3fb   :  { %v533_v38 = vmul.f32 0.35355338, %v2146_v37  ;;  %v500_v40 = vpop.f32.mrb[13].mxu1 }
 0x3fc   :  { %v531_v41 = vmul.f32 0.35355338, %v500_v40  ;;  %v2147_v43 = vpop.f32.mrb[14].mxu1 }
 0x3fd   :  { %v541_v44 = vadd.f32 %v533_v38, %v2727_v36  ;;  %v534_v45 = vmul.f32 0.35355338, %v2147_v43  ;;  %v503_v47 = vpop.f32.mrb[15].mxu1 }
 0x3fe   :  { %v539_v48 = vadd.f32 %v531_v41, %v2732_v39  ;;  %v532_v49 = vmul.f32 0.35355338, %v503_v47 }
 0x3ff   :  { %v551_v50 = vmul.f32 1.442695, %v541_v44  ;;  %v542_v51 = vadd.f32 %v534_v45, %v2737_v42 }
 0x400   :  { %v547_v52 = vmul.f32 1.442695, %v539_v48  ;;  %v540_v53 = vadd.f32 %v532_v49, %v2743_v46 }
 0x401   :  { %v553_v54 = vmul.f32 1.442695, %v542_v51 }
 0x402   :  { %2341 = vpow2.f32 %v547_v52  ;;  %v549_v57 = vmul.f32 1.442695, %v540_v53  ;;  %v2150_v62 = vpop.f32.mrb[16].mxu1 }
 0x403   :  { %2343 = vpow2.f32 %v551_v50  ;;  %v537_v3 = vmul.f32 0.35355338, %v2150_v62  ;;  %v516_v5 = vpop.f32.mrb[17].mxu1 }
 0x404   :  { %2345 = vpow2.f32 %v549_v57  ;;  %v535_v6 = vmul.f32 0.35355338, %v516_v5  ;;  %v2151_v8 = vpop.f32.mrb[18].mxu1 }
 0x405   :  { %v545_v9 = vadd.f32 %v537_v3, %v2751_v58  ;;  %v538_v10 = vmul.f32 0.35355338, %v2151_v8  ;;  %v519_v12 = vpop.f32.mrb[19].mxu1  ;;  %2347 = vpow2.f32 %v553_v54 }
 0x406   :  { %v543_v14 = vadd.f32 %v535_v6, %v2756_v4  ;;  %v536_v15 = vmul.f32 0.35355338, %v519_v12 }
 0x407   :  { %v559_v17 = vmul.f32 1.442695, %v545_v9  ;;  %v546_v18 = vadd.f32 %v538_v10, %v2761_v7 }
 0x408   :  { %v555_v19 = vmul.f32 1.442695, %v543_v14  ;;  %v544_v20 = vadd.f32 %v536_v15, %v2767_v11 }
 0x409   :  { %v561_v21 = vmul.f32 1.442695, %v546_v18 }
 0x40a   :  { %2349 = vpow2.f32 %v555_v19  ;;  %v557_v22 = vmul.f32 1.442695, %v544_v20 }
 0x40b   :  { %2351 = vpow2.f32 %v559_v17 }
 0x40c   :  { %v2342_v23 = vpop.eup %2341  ;;  %2353 = vpow2.f32 %v557_v22  ;;  %v2305_v22 = vld [vmem:[%s3113_s13] sm:$0xff]  }
 0x40d   :  { %v2344_v24 = vpop.eup %2343  ;;  %v564_v25 = vsel %vm563_vm2, %v2342_v23, 0.0  ;;  %2355 = vpow2.f32 %v561_v21  ;;  %2163 = vmatpush3.bf16.msra.mxu1 %v2305_v22  ;;  %v2308_v22 = vld [vmem:[%s3115_s17 + $0x8] sm:$0xff]  }
 0x40e   :  { %v2346_v26 = vpop.eup %2345  ;;  %565 = vadd.xlane.f32.xlu0 %v564_v25  ;;  %v570_v29 = vsel %vm563_vm2, %v2344_v24, 0.0  ;;  %2164 = vmatprep.subr.bf16.mxu1 %v2441_v0 }
 0x40f   :  { %v567_v27 = vsel %vm563_vm2, %v2346_v26, 0.0  ;;  %v2348_v28 = vpop.eup %2347 }
 0x410   :  { %568 = vadd.xlane.f32.xlu1 %v567_v27  ;;  %v573_v30 = vsel %vm563_vm2, %v2348_v28, 0.0 }
 0x412   :  { %571 = vadd.xlane.f32.xlu0 %v570_v29 }
 0x414   :  { %v2350_v31 = vpop.eup %2349  ;;  %574 = vadd.xlane.f32.xlu1 %v573_v30 }
 0x415   :  { %v2352_v32 = vpop.eup %2351  ;;  %v576_v33 = vsel %vm563_vm2, %v2350_v31, 0.0 }
 0x416   :  { %v2354_v34 = vpop.eup %2353  ;;  %577 = vadd.xlane.f32.xlu0 %v576_v33  ;;  %v582_v38 = vsel %vm563_vm2, %v2352_v32, 0.0 }
 0x417   :  { %v579_v35 = vsel %vm563_vm2, %v2354_v34, 0.0  ;;  %v2356_v37 = vpop.eup %2355 }
 0x418   :  { %580 = vadd.xlane.f32.xlu1 %v579_v35  ;;  %v585_v40 = vsel %vm563_vm2, %v2356_v37, 0.0 }
 0x41a   :  { %583 = vadd.xlane.f32.xlu0 %v582_v38 }
 0x41c   :  { %586 = vadd.xlane.f32.xlu1 %v585_v40 }
 0x49b   :  { %v566_v41 = vpop.xlane.xlu0 %565 }
 0x49c   :  { %2357 = vrcp.f32 %v566_v41 }
 0x49d   :  { %v569_v43 = vpop.xlane.xlu1 %568 }
 0x49e   :  { %2359 = vrcp.f32 %v569_v43 }
 0x49f   :  { %v572_v44 = vpop.xlane.xlu0 %571 }
 0x4a0   :  { %2361 = vrcp.f32 %v572_v44 }
 0x4a1   :  { %v575_v45 = vpop.xlane.xlu1 %574 }
 0x4a2   :  { %2363 = vrcp.f32 %v575_v45 }
 0x4a3   :  { %v578_v47 = vpop.xlane.xlu0 %577 }
 0x4a4   :  { %2365 = vrcp.f32 %v578_v47 }
 0x4a5   :  { %v581_v48 = vpop.xlane.xlu1 %580 }
 0x4a6   :  { %v2358_v49 = vpop.eup %2357  ;;  %2367 = vrcp.f32 %v581_v48 }
 0x4a7   :  { %v584_v50 = vpop.xlane.xlu0 %583  ;;  %v596_v53 = vmul.f32 %v2358_v49, %v2342_v23  ;;  %v2306_v23 = vld [vmem:[%s3113_s13 + $0x8] sm:$0xff]  }
 0x4a8   :  { %v2360_v51 = vpop.eup %2359  ;;  %2369 = vrcp.f32 %v584_v50  ;;  %2165 = vmatpush3.bf16.msra.mxu1 %v2306_v23  ;;  %v2309_v23 = vld [vmem:[%s3116_s19] sm:$0xff]  }
 0x4a9   :  { %v587_v52 = vpop.xlane.xlu1 %586  ;;  %v597_v54 = vmul.f32 %v2360_v51, %v2346_v26  ;;  %2178 = vmatprep.subr.bf16.mxu1 %v2441_v0 }
 0x4aa   :  { %v2362_v57 = vpop.eup %2361  ;;  %2371 = vrcp.f32 %v587_v52  ;;  %v1919_v52 = vld [vmem:[%s3114_s14] ss:$0 sm:$0xff] }
 0x4ab   :  { %v604_v62 = vpack.c.bf16 %v597_v54, %v596_v53  ;;  %v598_v5 = vmul.f32 %v2362_v57, %v2344_v24 }
 0x4ac   :  { %v2364_v3 = vpop.eup %2363 }
 0x4ad   :  { %v599_v6 = vmul.f32 %v2364_v3, %v2348_v28  ;;  %2154 = vmatprep.mubr.msk.bf16.mxu0 %vm563_vm2, %v604_v62 }
 0x4ae   :  { %v2366_v8 = vpop.eup %2365 }
 0x4af   :  { %v605_v9 = vpack.c.bf16 %v599_v6, %v598_v5  ;;  %v600_v12 = vmul.f32 %v2366_v8, %v2350_v31 }
 0x4b0   :  { %v2368_v10 = vpop.eup %2367 }
 0x4b1   :  { %2155 = vmatmul.mubr.msk.bf16.vlgmr.msra.gmra.mrb[4].mxu0 %vm563_vm2, %v605_v9  ;;  %v601_v14 = vmul.f32 %v2368_v10, %v2354_v34 }
 0x4b2   :  { %v2370_v15 = vpop.eup %2369 }
 0x4b3   :  { %v606_v17 = vpack.c.bf16 %v601_v14, %v600_v12  ;;  %v602_v19 = vmul.f32 %v2370_v15, %v2352_v32 }
 0x4b4   :  { %v2372_v18 = vpop.eup %2371 }
 0x4b5   :  { %2158 = vmatprep.mubr.msk.bf16.mxu0 %vm563_vm2, %v606_v17  ;;  %v603_v20 = vmul.f32 %v2372_v18, %v2356_v37 }
 0x4b7   :  { %v607_v21 = vpack.c.bf16 %v603_v20, %v602_v19 }
 0x4b9   :  { %2159 = vmatmul.mubr.msk.bf16.gmra.mrb[8].mxu0 %vm563_vm2, %v607_v21  ;;  %v2307_v21 = vld [vmem:[%s3115_s17] sm:$0xff]  }
 0x4ba   :  { %2174 = vmatprep.mubr.msk.bf16.mxu0 %vm2442_vm0, %v2441_v0  ;;  %2171 = vmatpush3.bf16.msra.mxu0 %v2307_v21 }
 0x4bb   :  { %2172 = vmatprep.subr.bf16.mxu0 %v2441_v0 }
 0x4be   :  { %2173 = vmatpush3.bf16.msra.mxu0 %v2308_v22  ;;  %v1934_v22 = vld [vmem:[%s3120_s20] ss:$0 sm:$0xff] }
 0x4bf   :  { %2198 = vmatprep.subr.bf16.mxu0 %v2441_v0 }
 0x584   :  { %v2156_v24 = vpop.f32.mrb[4].mxu0 }
 0x585   :  { %v688_v25 = vmul.f32 %v2156_v24, %v2668_v56  ;;  %v655_v26 = vpop.f32.mrb[5].mxu0  ;;  %v2310_v24 = vld [vmem:[%s3116_s19 + $0x8] sm:$0xff]  }
 0x586   :  { %v686_v27 = vmul.f32 %v655_v26, %v2663_v55  ;;  %v2157_v28 = vpop.f32.mrb[6].mxu0 }
 0x587   :  { %v689_v29 = vmul.f32 %v2157_v28, %v2688_v63  ;;  %v658_v30 = vpop.f32.mrb[7].mxu0 }
 0x588   :  { %v694_v31 = vadd.f32 %v688_v25, %v686_v27  ;;  %v687_v32 = vmul.f32 %v658_v30, %v2683_v61 }
 0x58a   :  { %v695_v33 = vadd.f32 %v689_v29, %v687_v32  ;;  %v1920_v32 = vld [vmem:[%s3117_s15] ss:$0 sm:$0xff] }
 0x58c   :  { %v2160_v34 = vpop.f32.mrb[8].mxu0 }
 0x58d   :  { %v671_v35 = vpop.f32.mrb[9].mxu0  ;;  %v692_v41 = vmul.f32 %v2160_v34, %v2678_v60 }
 0x58e   :  { %v690_v37 = vmul.f32 %v671_v35, %v2673_v59  ;;  %v2161_v38 = vpop.f32.mrb[10].mxu0 }
 0x58f   :  { %v674_v40 = vpop.f32.mrb[11].mxu0  ;;  %v693_v47 = vmul.f32 %v2161_v38, %v2698_v2  ;;  %v1921_v38 = vld [vmem:[%s3118_s16] ss:$0 sm:$0xff] }
 0x590   :  { %v696_v43 = vadd.f32 %v694_v31, %v690_v37  ;;  %v691_v44 = vmul.f32 %v674_v40, %v2693_v1 }
 0x592   :  { %v698_v45 = vadd.f32 %v696_v43, %v692_v41  ;;  %v697_v48 = vadd.f32 %v695_v33, %v691_v44 }
 0x594   :  { %v699_v49 = vadd.f32 %v697_v48, %v693_v47  ;;  %v2312_v47 = vld [vmem:[%s3116_s19 + $0x18] sm:$0xff]   ;;  %v2313_v48 = vld [vmem:[%s3116_s19 + $0x20] sm:$0xff]  }
 0x596   :  { %v700_v50 = vpack.c.bf16 %v699_v49, %v698_v45  ;;  %v2311_v45 = vld [vmem:[%s3116_s19 + $0x10] sm:$0xff]   ;;  %v2314_v49 = vld [vmem:[%s3116_s19 + $0x28] sm:$0xff]  }
 0x598   :  { %2167 = vmatmul.mubr.msk.bf16.vlgmr.msra.gmra.mrb[20].mxu1 %vm208_vm1, %v700_v50  ;;  %v2315_v50 = vld [vmem:[%s3116_s19 + $0x30] sm:$0xff]  }
 0x599   :  { %2194 = vmatprep.mubr.msk.bf16.mxu1 %vm2442_vm0, %v2441_v0  ;;  %2179 = vmatpush3.bf16.msra.mxu1 %v2309_v23 }
 0x59a   :  { %2180 = vmatprep.subr.bf16.mxu1 %v2441_v0 }
 0x59d   :  { %2181 = vmatpush3.bf16.msra.mxu1 %v2310_v24 }
 0x59e   :  { %2182 = vmatprep.subr.bf16.mxu1 %v2441_v0 }
 0x5a1   :  { %2183 = vmatpush3.bf16.msra.mxu1 %v2311_v45 }
 0x5a2   :  { %2184 = vmatprep.subr.bf16.mxu1 %v2441_v0 }
 0x5a5   :  { %2185 = vmatpush3.bf16.msra.mxu1 %v2312_v47 }
 0x5a6   :  { %2186 = vmatprep.subr.bf16.mxu1 %v2441_v0 }
 0x5a9   :  { %2187 = vmatpush3.bf16.msra.mxu1 %v2313_v48 }
 0x5aa   :  { %2188 = vmatprep.subr.bf16.mxu1 %v2441_v0 }
 0x5ad   :  { %2189 = vmatpush3.bf16.msra.mxu1 %v2314_v49 }
 0x5ae   :  { %2190 = vmatprep.subr.bf16.mxu1 %v2441_v0 }
 0x5b1   :  { %2191 = vmatpush3.bf16.msra.mxu1 %v2315_v50 }
 0x5b2   :  { %2192 = vmatprep.subr.bf16.mxu1 %v2441_v0 }
 0x66b   :  { %v754_v51 = vpop.f32.mrb[20].mxu1 }
 0x66c   :  { %v761_v53 = vadd.f32 %v754_v51, %v2609_v13  ;;  %v2168_v54 = vpop.f32.mrb[21].mxu1  ;;  %v2316_v51 = vld [vmem:[%s3116_s19 + $0x38] sm:$0xff]  }
 0x66d   :  { %v757_v57 = vpop.f32.mrb[22].mxu1  ;;  %2193 = vmatpush3.bf16.msra.mxu1 %v2316_v51 }
 0x66e   :  { %v2809_v62 = vadd.f32 %v1919_v52, %v761_v53  ;;  %v762_v3 = vadd.f32 %v757_v57, %v2611_v16  ;;  %v2169_v5 = vpop.f32.mrb[23].mxu1 }
 0x670   :  { %v2812_v6 = vadd.f32 %v1919_v52, %v762_v3  ;;  %v772_v8 = vsel %vm208_vm1, %v2809_v62, 0.0  ;;  %v1922_v52 = vld [vmem:[%s3119_s18] ss:$0 sm:$0xff] }
 0x671   :  { %773 = vadd.xlane.f32.xlu0 %v772_v8 }
 0x672   :  { %v775_v9 = vsel %vm208_vm1, %v2812_v6, 0.0 }
 0x673   :  { %776 = vadd.xlane.f32.xlu1 %v775_v9 }
 0x6fe   :  { %v774_v10 = vpop.xlane.xlu0 %773 }
 0x6ff   :  { %v778_v12 = vmul.f32 0.03125, %v774_v10 }
 0x700   :  { %v777_v13 = vpop.xlane.xlu1 %776 }
 0x701   :  { %v780_v14 = vsub.f32 %v2809_v62, %v778_v12  ;;  %v779_v15 = vmul.f32 0.03125, %v777_v13 }
 0x703   :  { %v781_v17 = vsub.f32 %v2812_v6, %v779_v15  ;;  %v782_v16 = vmul.f32 %v780_v14, %v780_v14 }
 0x705   :  { %v784_v18 = vsel %vm208_vm1, %v782_v16, 0.0  ;;  %v783_v19 = vmul.f32 %v781_v17, %v781_v17 }
 0x706   :  { %785 = vadd.xlane.f32.xlu0 %v784_v18 }
 0x707   :  { %v787_v20 = vsel %vm208_vm1, %v783_v19, 0.0 }
 0x708   :  { %788 = vadd.xlane.f32.xlu1 %v787_v20 }
 0x793   :  { %v786_v25 = vpop.xlane.xlu0 %785 }
 0x794   :  { %v790_v26 = vmul.f32 0.03125, %v786_v25 }
 0x795   :  { %v789_v27 = vpop.xlane.xlu1 %788 }
 0x796   :  { %v792_v28 = vadd.f32 1e-05, %v790_v26  ;;  %v791_v29 = vmul.f32 0.03125, %v789_v27 }
 0x798   :  { %2373 = vrsqrt.f32 %v792_v28  ;;  %v793_v30 = vadd.f32 1e-05, %v791_v29 }
 0x79a   :  { %2375 = vrsqrt.f32 %v793_v30 }
 0x7a2   :  { %v2374_v31 = vpop.eup %2373 }
 0x7a3   :  { %v796_v33 = vmul.f32 %v2374_v31, %v780_v14 }
 0x7a4   :  { %v2376_v34 = vpop.eup %2375 }
 0x7a5   :  { %v802_v35 = vmul.f32 %v1920_v32, %v796_v33  ;;  %v797_v37 = vmul.f32 %v2376_v34, %v781_v17 }
 0x7a7   :  { %v803_v40 = vmul.f32 %v1920_v32, %v797_v37  ;;  %v808_v41 = vadd.f32 %v1921_v38, %v802_v35 }
 0x7a9   :  { %v809_v43 = vadd.f32 %v1921_v38, %v803_v40 }
 0x7ab   :  { %v810_v44 = vpack.c.bf16 %v809_v43, %v808_v41  ;;  %v2317_v43 = vld [vmem:[%s3142_s29 + $0x10] sm:$0xff]  }
 0x7ad   :  { %2175 = vmatmul.mubr.msk.bf16.vlgmr.msra.gmra.mrb[12].mxu0 %vm208_vm1, %v810_v44  ;;  %v2318_v44 = vld [vmem:[%s3142_s29 + $0x18] sm:$0xff]  }
 0x7ae   :  { %2202 = vmatprep.mubr.msk.bf16.mxu0 %vm2442_vm0, %v2441_v0  ;;  %2199 = vmatpush3.bf16.msra.mxu0 %v2317_v43 }
 0x7af   :  { %2200 = vmatprep.subr.bf16.mxu0 %v2441_v0 }
 0x7b2   :  { %2201 = vmatpush3.bf16.msra.mxu0 %v2318_v44 }
 0x7b3   :  { %2206 = vmatprep.subr.bf16.mxu0 %v2441_v0 }
 0x880   :  { %v869_v53 = vpop.f32.mrb[12].mxu0 }
 0x881   :  { %v870_v54 = vadd.f32 %v1922_v52, %v869_v53  ;;  %v2176_v57 = vpop.f32.mrb[13].mxu0  ;;  %v1935_v53 = vld [vmem:[%s3143_s25 + $0x1] ss:$0 sm:$0xff] }
 0x882   :  { %v872_v3 = vpop.f32.mrb[14].mxu0 }
 0x883   :  { %v878_v5 = vmul.f32 0.70710677, %v870_v54  ;;  %v873_v8 = vadd.f32 %v1922_v52, %v872_v3  ;;  %v2177_v9 = vpop.f32.mrb[15].mxu0  ;;  %v876_v15 = vmul.f32 0.5, %v870_v54  ;;  %v1936_v3 = vld [vmem:[%s3144_s26 + $0x1] ss:$0 sm:$0xff] }
 0x885   :  { %2377 = verf.f32 %v878_v5  ;;  %v879_v10 = vmul.f32 0.70710677, %v873_v8  ;;  %v877_v17 = vmul.f32 0.5, %v873_v8 }
 0x887   :  { %2379 = verf.f32 %v879_v10 }
 0x88f   :  { %v2378_v12 = vpop.eup %2377 }
 0x890   :  { %v882_v13 = vadd.f32 1.0, %v2378_v12 }
 0x891   :  { %v2380_v14 = vpop.eup %2379 }
 0x892   :  { %v883_v16 = vadd.f32 1.0, %v2380_v14  ;;  %v884_v18 = vmul.f32 %v882_v13, %v876_v15  ;;  %v2319_v13 = vld [vmem:[%s3145_s27 + $0x10] sm:$0xff]   ;;  %v2320_v15 = vld [vmem:[%s3145_s27 + $0x18] sm:$0xff]  }
 0x894   :  { %v885_v19 = vmul.f32 %v883_v16, %v877_v17  ;;  %v2321_v17 = vld [vmem:[%s3146_s3 + $0x10] sm:$0xff]   ;;  %v2322_v16 = vld [vmem:[%s3146_s3 + $0x18] sm:$0xff]  }
 0x896   :  { %v886_v20 = vpack.c.bf16 %v885_v19, %v884_v18  ;;  %v1941_v18 = vld [vmem:[%s3108_s10 + $0x1] ss:$0 sm:$0xff] }
 0x898   :  { %2195 = vmatmul.mubr.bf16.vlgmr.msra.gmra.mrb[24].mxu1 %v886_v20 }
 0x96b   :  { %v985_v21 = vpop.f32.mrb[24].mxu1 }
 0x96c   :  { %v992_v23 = vadd.f32 %v985_v21, %v2809_v62  ;;  %v2196_v24 = vpop.f32.mrb[25].mxu1 }
 0x96d   :  { %v988_v25 = vpop.f32.mrb[26].mxu1 }
 0x96e   :  { %v2877_v26 = vadd.f32 %v1934_v22, %v992_v23  ;;  %v993_v27 = vadd.f32 %v988_v25, %v2812_v6  ;;  %v2197_v28 = vpop.f32.mrb[27].mxu1 }
 0x970   :  { %v2880_v29 = vadd.f32 %v1934_v22, %v993_v27  ;;  %v1003_v30 = vsel %vm208_vm1, %v2877_v26, 0.0 }
 0x971   :  { %1004 = vadd.xlane.f32.xlu0 %v1003_v30 }
 0x972   :  { %v1006_v31 = vsel %vm208_vm1, %v2880_v29, 0.0 }
 0x973   :  { %1007 = vadd.xlane.f32.xlu1 %v1006_v31 }
 0x9fe   :  { %v1005_v32 = vpop.xlane.xlu0 %1004 }
 0x9ff   :  { %v1009_v33 = vmul.f32 0.03125, %v1005_v32 }
 0xa00   :  { %v1008_v62 = vpop.xlane.xlu1 %1007 }
 0xa01   :  { %v1011_v34 = vsub.f32 %v2877_v26, %v1009_v33  ;;  %v1010_v35 = vmul.f32 0.03125, %v1008_v62 }
 0xa03   :  { %v1012_v37 = vsub.f32 %v2880_v29, %v1010_v35  ;;  %v1013_v6 = vmul.f32 %v1011_v34, %v1011_v34  ;;  %v1949_v35 = vld [vmem:[%s3110_s11 + $0x1] ss:$0 sm:$0xff] }
 0xa05   :  { %v1015_v38 = vsel %vm208_vm1, %v1013_v6, 0.0  ;;  %v1014_v40 = vmul.f32 %v1012_v37, %v1012_v37 }
 0xa06   :  { %1016 = vadd.xlane.f32.xlu0 %v1015_v38 }
 0xa07   :  { %v1018_v41 = vsel %vm208_vm1, %v1014_v40, 0.0 }
 0xa08   :  { %1019 = vadd.xlane.f32.xlu1 %v1018_v41 }
 0xa93   :  { %v1017_v45 = vpop.xlane.xlu0 %1016 }
 0xa94   :  { %v1021_v47 = vmul.f32 0.03125, %v1017_v45 }
 0xa95   :  { %v1020_v48 = vpop.xlane.xlu1 %1019 }
 0xa96   :  { %v1023_v49 = vadd.f32 1e-05, %v1021_v47  ;;  %v1022_v50 = vmul.f32 0.03125, %v1020_v48 }
 0xa98   :  { %2381 = vrsqrt.f32 %v1023_v49  ;;  %v1024_v51 = vadd.f32 1e-05, %v1022_v50 }
 0xa9a   :  { %2383 = vrsqrt.f32 %v1024_v51 }
 0xaa2   :  { %v2382_v52 = vpop.eup %2381 }
 0xaa3   :  { %v1027_v54 = vmul.f32 %v2382_v52, %v1011_v34 }
 0xaa4   :  { %v2384_v57 = vpop.eup %2383 }
 0xaa5   :  { %v1033_v5 = vmul.f32 %v1935_v53, %v1027_v54  ;;  %v1028_v8 = vmul.f32 %v2384_v57, %v1012_v37 }
 0xaa7   :  { %v1034_v9 = vmul.f32 %v1935_v53, %v1028_v8  ;;  %v1039_v10 = vadd.f32 %v1936_v3, %v1033_v5 }
 0xaa9   :  { %v1040_v12 = vadd.f32 %v1936_v3, %v1034_v9 }
 0xaab   :  { %v1041_v14 = vpack.c.bf16 %v1040_v12, %v1039_v10 }
 0xaad   :  { %2203 = vmatmul.mubr.msk.bf16.vlgmr.msra.gmra.mrb[16].mxu0 %vm208_vm1, %v1041_v14 }
 0xaae   :  { %2207 = vmatpush3.bf16.msra.mxu0 %v2319_v13  ;;  %2210 = vmatprep.mubr.msk.bf16.mxu0 %vm2442_vm0, %v2441_v0 }
 0xaaf   :  { %2208 = vmatprep.subr.bf16.mxu0 %v2441_v0 }
 0xab2   :  { %2209 = vmatpush3.bf16.msra.mxu0 %v2320_v15 }
 0xab3   :  { %2214 = vmatprep.subr.bf16.mxu0 %v2441_v0 }
 0xab5   :  { %2211 = vmatmul.mubr.msk.bf16.vlgmr.msra.gmra.mrb[20].mxu0 %vm208_vm1, %v1041_v14 }
 0xab6   :  { %2215 = vmatpush3.bf16.msra.mxu0 %v2321_v17  ;;  %2218 = vmatprep.mubr.msk.bf16.mxu0 %vm2442_vm0, %v2441_v0 }
 0xab7   :  { %2216 = vmatprep.subr.bf16.mxu0 %v2441_v0 }
 0xaba   :  { %2217 = vmatpush3.bf16.msra.mxu0 %v2322_v16 }
 0xabd   :  { %2219 = vmatmul.mubr.msk.bf16.vlgmr.msra.gmra.mrb[24].mxu0 %vm208_vm1, %v1041_v14 }
 0xb80   :  { %v1101_v19 = vpop.f32.mrb[16].mxu0 }
 0xb81   :  { %v1102_v20 = vadd.f32 %v1941_v18, %v1101_v19  ;;  %v2204_v21 = vpop.f32.mrb[17].mxu0 }
 0xb82   :  { %v1104_v22 = vpop.f32.mrb[18].mxu0 }
 0xb83   :  { %v2205_v23 = vpop.f32.mrb[19].mxu0  ;;  %v1105_v24 = vadd.f32 %v1941_v18, %v1104_v22  ;;  %v1234_v25 = vmul.f32 %v1102_v20, %v2663_v55  ;;  %v1236_v27 = vmul.f32 %v1102_v20, %v2668_v56  ;;  %v1238_v28 = vmul.f32 %v1102_v20, %v2673_v59 }
 0xb84   :  { %v1240_v30 = vmul.f32 %v1102_v20, %v2678_v60 }
 0xb85   :  { %v1235_v31 = vmul.f32 %v1105_v24, %v2683_v61  ;;  %v1237_v32 = vmul.f32 %v1105_v24, %v2688_v63  ;;  %v1239_v33 = vmul.f32 %v1105_v24, %v2693_v1  ;;  %v1241_v62 = vmul.f32 %v1105_v24, %v2698_v2  ;;  %v1957_v2 = vld [vmem:[%s3111_s12 + $0x1] ss:$0 sm:$0xff] }
 0xb87   :  { %v1243_v34 = vpack.c.bf16 %v1237_v32, %v1236_v27  ;;  %v1242_v37 = vpack.c.bf16 %v1235_v31, %v1234_v25  ;;  %v1244_v56 = vpack.c.bf16 %v1239_v33, %v1238_v28  ;;  %v1245_v6 = vpack.c.bf16 %v1241_v62, %v1240_v30 }
 0xb88   :  { %v1164_v55 = vpop.f32.mrb[20].mxu0 }
 0xb89   :  { %v2212_v59 = vpop.f32.mrb[21].mxu0  ;;  %2224 = vmatprep.mubr.msk.bf16.mxu0 %vm208_vm1, %v1242_v37  ;;  %v1165_v61 = vadd.f32 %v1949_v35, %v1164_v55 }
 0xb8a   :  { %v1167_v60 = vpop.f32.mrb[22].mxu0 }
 0xb8b   :  { %v1168_v38 = vadd.f32 %v1949_v35, %v1167_v60  ;;  %v2213_v63 = vpop.f32.mrb[23].mxu0 }
 0xb8d   :  { %v1246_v40 = vpack.c.bf16 %v1168_v38, %v1165_v61 }
 0xb8f   :  { %2287 = vmatprep.subr.msk.bf16.mxu0 %vm208_vm1, %v1246_v40  ;;  %v1260_v1 = vsel %vm208_vm1, %v1246_v40, 0 }
 0xb90   :  { %v1227_v41 = vpop.f32.mrb[24].mxu0  ;;  %2223 = vmatpush3.bf16.xpose.msra.mxu0 %v1260_v1 }
 0xb91   :  { %v2220_v43 = vpop.f32.mrb[25].mxu0  ;;  %2258 = vmatprep.subr.bf16.mxu0 %v2441_v0  ;;  %v1228_v45 = vadd.f32 %v1957_v2, %v1227_v41 }
 0xb92   :  { %v1230_v44 = vpop.f32.mrb[26].mxu0 }
 0xb93   :  { %v1231_v47 = vadd.f32 %v1957_v2, %v1230_v44  ;;  %v2221_v48 = vpop.f32.mrb[27].mxu0 }
 0xb95   :  { %v1403_v49 = vpack.c.bf16 %v1231_v47, %v1228_v45 }
 0xb97   :  { %2225 = vmatmul.mubr.msk.bf16.vlgmr.msra.gmra.mrb[28].mxu0 %vm208_vm1, %v1243_v34  ;;  %2232 = vmatprep.subr.bf16.mxu1 %v1403_v49 }
 0xb98   :  { %2228 = vmatprep.mubr.msk.bf16.mxu0 %vm208_vm1, %v1244_v56  ;;  %2233 = vmatpush3.bf16.msra.mxu1 %v1403_v49 }
 0xb99   :  { %2242 = vmatprep.subr.bf16.mxu1 %v2441_v0 }
 0xb9f   :  { %2229 = vmatmul.mubr.msk.bf16.gmra.mrb[32].mxu0 %vm208_vm1, %v1245_v6 }
 0xba0   :  { %2274 = vmatprep.mubr.msk.bf16.mxu0 %vm2442_vm0, %v2441_v0 }
 0xc6a   :  { %v2226_v50 = vpop.f32.mrb[28].mxu0 }
 0xc6b   :  { %v1329_v51 = vmul.f32 0.35355338, %v2226_v50  ;;  %v1296_v52 = vpop.f32.mrb[29].mxu0 }
 0xc6c   :  { %v1327_v53 = vmul.f32 0.35355338, %v1296_v52  ;;  %v2227_v54 = vpop.f32.mrb[30].mxu0 }
 0xc6d   :  { %v1337_v57 = vadd.f32 %v1329_v51, %v2727_v36  ;;  %v1330_v3 = vmul.f32 0.35355338, %v2227_v54  ;;  %v1299_v5 = vpop.f32.mrb[31].mxu0 }
 0xc6e   :  { %v1335_v8 = vadd.f32 %v1327_v53, %v2732_v39  ;;  %v1328_v9 = vmul.f32 0.35355338, %v1299_v5 }
 0xc6f   :  { %v1347_v10 = vmul.f32 1.442695, %v1337_v57  ;;  %v1338_v12 = vadd.f32 %v1330_v3, %v2737_v42 }
 0xc70   :  { %v1343_v13 = vmul.f32 1.442695, %v1335_v8  ;;  %v1336_v14 = vadd.f32 %v1328_v9, %v2743_v46 }
 0xc71   :  { %v1349_v15 = vmul.f32 1.442695, %v1338_v12 }
 0xc72   :  { %2385 = vpow2.f32 %v1343_v13  ;;  %v1345_v17 = vmul.f32 1.442695, %v1336_v14  ;;  %v2230_v16 = vpop.f32.mrb[32].mxu0 }
 0xc73   :  { %2387 = vpow2.f32 %v1347_v10  ;;  %v1333_v18 = vmul.f32 0.35355338, %v2230_v16  ;;  %v1312_v19 = vpop.f32.mrb[33].mxu0  ;;  %v2324_v16 = vld [vmem:[%s3113_s13 + $0x18] sm:$0xff]  }
 0xc74   :  { %2389 = vpow2.f32 %v1345_v17  ;;  %v1331_v36 = vmul.f32 0.35355338, %v1312_v19  ;;  %v2231_v20 = vpop.f32.mrb[34].mxu0  ;;  %v2323_v17 = vld [vmem:[%s3113_s13 + $0x10] sm:$0xff]  }
 0xc75   :  { %v1341_v21 = vadd.f32 %v1333_v18, %v2751_v58  ;;  %v1334_v39 = vmul.f32 0.35355338, %v2231_v20  ;;  %v1315_v22 = vpop.f32.mrb[35].mxu0  ;;  %2391 = vpow2.f32 %v1349_v15  ;;  %v2433_v19 = vld [vmem:[%s3109_s1 + $0x10] sm:$0xff] }
 0xc76   :  { %v1339_v42 = vadd.f32 %v1331_v36, %v2756_v4  ;;  %v1332_v23 = vmul.f32 0.35355338, %v1315_v22 }
 0xc77   :  { %v1355_v24 = vmul.f32 1.442695, %v1341_v21  ;;  %v1342_v46 = vadd.f32 %v1334_v39, %v2761_v7  ;;  %v2434_v21 = vld [vmem:[%s3109_s1] sm:$0xff] }
 0xc78   :  { %v1351_v25 = vmul.f32 1.442695, %v1339_v42  ;;  %v1340_v27 = vadd.f32 %v1332_v23, %v2767_v11  ;;  %v2435_v42 = vld [vmem:[%s3109_s1 + $0x18] sm:$0xff] }
 0xc79   :  { %v1357_v28 = vmul.f32 1.442695, %v1342_v46 }
 0xc7a   :  { %2393 = vpow2.f32 %v1351_v25  ;;  %v1353_v30 = vmul.f32 1.442695, %v1340_v27  ;;  %v2436_v25 = vld [vmem:[%s3109_s1 + $0x8] sm:$0xff] }
 0xc7b   :  { %2395 = vpow2.f32 %v1355_v24 }
 0xc7c   :  { %v2386_v31 = vpop.eup %2385  ;;  %2397 = vpow2.f32 %v1353_v30 }
 0xc7d   :  { %v2388_v32 = vpop.eup %2387  ;;  %v1359_v58 = vsel %vm563_vm2, %v2386_v31, 0.0  ;;  %2399 = vpow2.f32 %v1357_v28 }
 0xc7e   :  { %v2390_v33 = vpop.eup %2389  ;;  %1360 = vadd.xlane.f32.xlu0 %v1359_v58  ;;  %v1365_v7 = vsel %vm563_vm2, %v2388_v32, 0.0 }
 0xc7f   :  { %v1362_v4 = vsel %vm563_vm2, %v2390_v33, 0.0  ;;  %v2392_v62 = vpop.eup %2391 }
 0xc80   :  { %1363 = vadd.xlane.f32.xlu1 %v1362_v4  ;;  %v1368_v11 = vsel %vm563_vm2, %v2392_v62, 0.0 }
 0xc82   :  { %1366 = vadd.xlane.f32.xlu0 %v1365_v7 }
 0xc84   :  { %v2394_v34 = vpop.eup %2393  ;;  %1369 = vadd.xlane.f32.xlu1 %v1368_v11 }
 0xc85   :  { %v2396_v35 = vpop.eup %2395  ;;  %v1371_v55 = vsel %vm563_vm2, %v2394_v34, 0.0 }
 0xc86   :  { %v2398_v37 = vpop.eup %2397  ;;  %1372 = vadd.xlane.f32.xlu0 %v1371_v55  ;;  %v1377_v59 = vsel %vm563_vm2, %v2396_v35, 0.0 }
 0xc87   :  { %v1374_v56 = vsel %vm563_vm2, %v2398_v37, 0.0  ;;  %v2400_v6 = vpop.eup %2399 }
 0xc88   :  { %1375 = vadd.xlane.f32.xlu1 %v1374_v56  ;;  %v1380_v60 = vsel %vm563_vm2, %v2400_v6, 0.0 }
 0xc8a   :  { %1378 = vadd.xlane.f32.xlu0 %v1377_v59 }
 0xc8c   :  { %1381 = vadd.xlane.f32.xlu1 %v1380_v60 }
 0xd0b   :  { %v1361_v61 = vpop.xlane.xlu0 %1360 }
 0xd0c   :  { %2401 = vrcp.f32 %v1361_v61 }
 0xd0d   :  { %v1364_v38 = vpop.xlane.xlu1 %1363 }
 0xd0e   :  { %2403 = vrcp.f32 %v1364_v38  ;;  %v1976_v38 = vld [vmem:[%s3114_s14 + $0x1] ss:$0 sm:$0xff] }
 0xd0f   :  { %v1367_v63 = vpop.xlane.xlu0 %1366 }
 0xd10   :  { %2405 = vrcp.f32 %v1367_v63 }
 0xd11   :  { %v1370_v40 = vpop.xlane.xlu1 %1369 }
 0xd12   :  { %2407 = vrcp.f32 %v1370_v40 }
 0xd13   :  { %v1373_v1 = vpop.xlane.xlu0 %1372 }
 0xd14   :  { %2409 = vrcp.f32 %v1373_v1 }
 0xd15   :  { %v1376_v2 = vpop.xlane.xlu1 %1375 }
 0xd16   :  { %v2402_v41 = vpop.eup %2401  ;;  %2411 = vrcp.f32 %v1376_v2 }
 0xd17   :  { %v1379_v43 = vpop.xlane.xlu0 %1378  ;;  %v1391_v47 = vmul.f32 %v2402_v41, %v2386_v31 }
 0xd18   :  { %v2404_v44 = vpop.eup %2403  ;;  %2413 = vrcp.f32 %v1379_v43 }
 0xd19   :  { %v1382_v45 = vpop.xlane.xlu1 %1381  ;;  %v1392_v48 = vmul.f32 %v2404_v44, %v2390_v33 }
 0xd1a   :  { %v2406_v49 = vpop.eup %2405  ;;  %2415 = vrcp.f32 %v1382_v45 }
 0xd1b   :  { %v1399_v50 = vpack.c.bf16 %v1392_v48, %v1391_v47  ;;  %v1393_v52 = vmul.f32 %v2406_v49, %v2388_v32  ;;  %v2437_v32 = vld [vmem:[%s3109_s1 + $0x20] sm:$0xff] }
 0xd1c   :  { %v2408_v51 = vpop.eup %2407 }
 0xd1d   :  { %v1394_v53 = vmul.f32 %v2408_v51, %v2392_v62  ;;  %2234 = vmatprep.mubr.msk.bf16.mxu1 %vm563_vm2, %v1399_v50  ;;  %v2438_v62 = vld [vmem:[%s3109_s1 + $0x30] sm:$0xff] }
 0xd1e   :  { %v2410_v54 = vpop.eup %2409 }
 0xd1f   :  { %v1400_v57 = vpack.c.bf16 %v1394_v53, %v1393_v52  ;;  %v1395_v5 = vmul.f32 %v2410_v54, %v2394_v34  ;;  %v2439_v34 = vld [vmem:[%s3109_s1 + $0x28] sm:$0xff] }
 0xd20   :  { %v2412_v3 = vpop.eup %2411 }
 0xd21   :  { %2235 = vmatmul.mubr.msk.bf16.vlgmr.msra.gmra.mrb[28].mxu1 %vm563_vm2, %v1400_v57  ;;  %v1396_v8 = vmul.f32 %v2412_v3, %v2398_v37  ;;  %v2440_v37 = vld [vmem:[%s3109_s1 + $0x38] sm:$0xff]  ;;  %v2325_v3 = vld [vmem:[%s3115_s17 + $0x10] sm:$0xff]  }
 0xd22   :  { %v2414_v9 = vpop.eup %2413  ;;  %2243 = vmatpush3.bf16.msra.mxu1 %v2323_v17 }
 0xd23   :  { %v1401_v10 = vpack.c.bf16 %v1396_v8, %v1395_v5  ;;  %v1397_v13 = vmul.f32 %v2414_v9, %v2396_v35  ;;  %2244 = vmatprep.subr.bf16.mxu1 %v2441_v0  ;;  %v2326_v5 = vld [vmem:[%s3115_s17 + $0x18] sm:$0xff]   ;;  %v2327_v8 = vld [vmem:[%s3116_s19 + $0x40] sm:$0xff]   ;;  %v2328_v9 = vld [vmem:[%s3116_s19 + $0x48] sm:$0xff]  }
 0xd24   :  { %v2416_v12 = vpop.eup %2415  ;;  %2259 = vmatpush3.bf16.msra.mxu0 %v2327_v8 }
 0xd25   :  { %2238 = vmatprep.mubr.msk.bf16.mxu1 %vm563_vm2, %v1401_v10  ;;  %v1398_v14 = vmul.f32 %v2416_v12, %v2400_v6  ;;  %2260 = vmatprep.subr.bf16.mxu0 %v2441_v0 }
 0xd26   :  { %2245 = vmatpush3.bf16.msra.mxu1 %v2324_v16 }
 0xd27   :  { %v1402_v15 = vpack.c.bf16 %v1398_v14, %v1397_v13  ;;  %2250 = vmatprep.subr.bf16.mxu1 %v2441_v0 }
 0xd28   :  { %2261 = vmatpush3.bf16.msra.mxu0 %v2328_v9 }
 0xd29   :  { %2239 = vmatmul.mubr.msk.bf16.gmra.mrb[32].mxu1 %vm563_vm2, %v1402_v15  ;;  %2262 = vmatprep.subr.bf16.mxu0 %v2441_v0 }
 0xd2a   :  { %2246 = vmatprep.mubr.msk.bf16.mxu1 %vm2442_vm0, %v2441_v0 }
 0xdf4   :  { %v2236_v18 = vpop.f32.mrb[28].mxu1 }
 0xdf5   :  { %v1483_v36 = vmul.f32 %v2433_v19, %v2236_v18  ;;  %v1450_v20 = vpop.f32.mrb[29].mxu1  ;;  %v1977_v18 = vld [vmem:[%s3117_s15 + $0x1] ss:$0 sm:$0xff] }
 0xdf6   :  { %v1481_v39 = vmul.f32 %v2434_v21, %v1450_v20  ;;  %v2237_v22 = vpop.f32.mrb[30].mxu1 }
 0xdf7   :  { %v1484_v23 = vmul.f32 %v2435_v42, %v2237_v22  ;;  %v1453_v24 = vpop.f32.mrb[31].mxu1 }
 0xdf8   :  { %v1489_v46 = vadd.f32 %v1483_v36, %v1481_v39  ;;  %v1482_v27 = vmul.f32 %v2436_v25, %v1453_v24  ;;  %v1978_v39 = vld [vmem:[%s3118_s16 + $0x1] ss:$0 sm:$0xff]  ;;  %v2330_v25 = vld [vmem:[%s3116_s19 + $0x58] sm:$0xff]  }
 0xdfa   :  { %v1490_v28 = vadd.f32 %v1484_v23, %v1482_v27  ;;  %v2331_v27 = vld [vmem:[%s3116_s19 + $0x60] sm:$0xff]  }
 0xdfc   :  { %v2240_v30 = vpop.f32.mrb[32].mxu1 }
 0xdfd   :  { %v1466_v31 = vpop.f32.mrb[33].mxu1  ;;  %v1487_v7 = vmul.f32 %v2438_v62, %v2240_v30  ;;  %v2333_v30 = vld [vmem:[%s3116_s19 + $0x70] sm:$0xff]  }
 0xdfe   :  { %v1485_v58 = vmul.f32 %v2437_v32, %v1466_v31  ;;  %v2241_v33 = vpop.f32.mrb[34].mxu1  ;;  %v2334_v31 = vld [vmem:[%s3116_s19 + $0x78] sm:$0xff]   ;;  %v1983_v32 = vld [vmem:[%s3119_s18 + $0x1] ss:$0 sm:$0xff] }
 0xdff   :  { %v1469_v4 = vpop.f32.mrb[35].mxu1  ;;  %v1488_v56 = vmul.f32 %v2440_v37, %v2241_v33 }
 0xe00   :  { %v1491_v11 = vadd.f32 %v1489_v46, %v1485_v58  ;;  %v1486_v35 = vmul.f32 %v2439_v34, %v1469_v4  ;;  %v2329_v46 = vld [vmem:[%s3116_s19 + $0x50] sm:$0xff]  }
 0xe01   :  { %2263 = vmatpush3.bf16.msra.mxu0 %v2329_v46 }
 0xe02   :  { %v1493_v55 = vadd.f32 %v1491_v11, %v1487_v7  ;;  %v1492_v6 = vadd.f32 %v1490_v28, %v1486_v35  ;;  %2264 = vmatprep.subr.bf16.mxu0 %v2441_v0  ;;  %v2332_v28 = vld [vmem:[%s3116_s19 + $0x68] sm:$0xff]  }
 0xe04   :  { %v1494_v59 = vadd.f32 %v1492_v6, %v1488_v56 }
 0xe05   :  { %2265 = vmatpush3.bf16.msra.mxu0 %v2330_v25 }
 0xe06   :  { %v1495_v60 = vpack.c.bf16 %v1494_v59, %v1493_v55  ;;  %2266 = vmatprep.subr.bf16.mxu0 %v2441_v0 }
 0xe08   :  { %2247 = vmatmul.mubr.msk.bf16.vlgmr.msra.gmra.mrb[36].mxu1 %vm208_vm1, %v1495_v60 }
 0xe09   :  { %2254 = vmatprep.mubr.msk.bf16.mxu1 %vm2442_vm0, %v2441_v0  ;;  %2251 = vmatpush3.bf16.msra.mxu1 %v2325_v3 }
 0xe0a   :  { %2252 = vmatprep.subr.bf16.mxu1 %v2441_v0  ;;  %2267 = vmatpush3.bf16.msra.mxu0 %v2331_v27 }
 0xe0b   :  { %2268 = vmatprep.subr.bf16.mxu0 %v2441_v0 }
 0xe0d   :  { %2253 = vmatpush3.bf16.msra.mxu1 %v2326_v5 }
 0xe0e   :  { %2278 = vmatprep.subr.bf16.mxu1 %v2441_v0  ;;  %2269 = vmatpush3.bf16.msra.mxu0 %v2332_v28 }
 0xe0f   :  { %2270 = vmatprep.subr.bf16.mxu0 %v2441_v0 }
 0xe12   :  { %2271 = vmatpush3.bf16.msra.mxu0 %v2333_v30 }
 0xe13   :  { %2272 = vmatprep.subr.bf16.mxu0 %v2441_v0 }
 0xe16   :  { %2273 = vmatpush3.bf16.msra.mxu0 %v2334_v31 }
 0xedb   :  { %v1550_v61 = vpop.f32.mrb[36].mxu1 }
 0xedc   :  { %v1557_v63 = vadd.f32 %v1550_v61, %v2877_v26  ;;  %v2248_v40 = vpop.f32.mrb[37].mxu1 }
 0xedd   :  { %v1553_v1 = vpop.f32.mrb[38].mxu1  ;;  %v2335_v40 = vld [vmem:[%s3121_s21] sm:$0xff]  }
 0xede   :  { %v3014_v2 = vadd.f32 %v1976_v38, %v1557_v63  ;;  %v1558_v41 = vadd.f32 %v1553_v1, %v2880_v29  ;;  %v2249_v43 = vpop.f32.mrb[39].mxu1  ;;  %v2336_v1 = vld [vmem:[%s3121_s21 + $0x8] sm:$0xff]  }
 0xee0   :  { %v3017_v44 = vadd.f32 %v1976_v38, %v1558_v41  ;;  %v1568_v45 = vsel %vm208_vm1, %v3014_v2, 0.0 }
 0xee1   :  { %1569 = vadd.xlane.f32.xlu0 %v1568_v45 }
 0xee2   :  { %v1571_v47 = vsel %vm208_vm1, %v3017_v44, 0.0 }
 0xee3   :  { %1572 = vadd.xlane.f32.xlu1 %v1571_v47  ;;  %v2011_v47 = vld [vmem:[%s3120_s20 + $0x1] ss:$0 sm:$0xff] }
 0xf6e   :  { %v1570_v48 = vpop.xlane.xlu0 %1569 }
 0xf6f   :  { %v1574_v49 = vmul.f32 0.03125, %v1570_v48 }
 0xf70   :  { %v1573_v26 = vpop.xlane.xlu1 %1572 }
 0xf71   :  { %v1576_v50 = vsub.f32 %v3014_v2, %v1574_v49  ;;  %v1575_v51 = vmul.f32 0.03125, %v1573_v26 }
 0xf73   :  { %v1577_v52 = vsub.f32 %v3017_v44, %v1575_v51  ;;  %v1578_v29 = vmul.f32 %v1576_v50, %v1576_v50 }
 0xf75   :  { %v1580_v53 = vsel %vm208_vm1, %v1578_v29, 0.0  ;;  %v1579_v54 = vmul.f32 %v1577_v52, %v1577_v52 }
 0xf76   :  { %1581 = vadd.xlane.f32.xlu0 %v1580_v53 }
 0xf77   :  { %v1583_v57 = vsel %vm208_vm1, %v1579_v54, 0.0 }
 0xf78   :  { %1584 = vadd.xlane.f32.xlu1 %v1583_v57 }
0x1003   :  { %v1582_v10 = vpop.xlane.xlu0 %1581 }
0x1004   :  { %v1586_v12 = vmul.f32 0.03125, %v1582_v10 }
0x1005   :  { %v1585_v13 = vpop.xlane.xlu1 %1584 }
0x1006   :  { %v1588_v14 = vadd.f32 1e-05, %v1586_v12  ;;  %v1587_v15 = vmul.f32 0.03125, %v1585_v13 }
0x1008   :  { %2417 = vrsqrt.f32 %v1588_v14  ;;  %v1589_v17 = vadd.f32 1e-05, %v1587_v15 }
0x100a   :  { %2419 = vrsqrt.f32 %v1589_v17 }
0x1012   :  { %v2418_v16 = vpop.eup %2417 }
0x1013   :  { %v1592_v19 = vmul.f32 %v2418_v16, %v1576_v50 }
0x1014   :  { %v2420_v36 = vpop.eup %2419 }
0x1015   :  { %v1598_v20 = vmul.f32 %v1977_v18, %v1592_v19  ;;  %v1593_v21 = vmul.f32 %v2420_v36, %v1577_v52  ;;  %v2012_v52 = vld [vmem:[%s3122_s22] ss:$0 sm:$0xff] }
0x1017   :  { %v1599_v22 = vmul.f32 %v1977_v18, %v1593_v21  ;;  %v1604_v42 = vadd.f32 %v1978_v39, %v1598_v20 }
0x1019   :  { %v1605_v23 = vadd.f32 %v1978_v39, %v1599_v22 }
0x101b   :  { %v1606_v24 = vpack.c.bf16 %v1605_v23, %v1604_v42 }
0x101d   :  { %2255 = vmatmul.mubr.msk.bf16.vlgmr.msra.gmra.mrb[40].mxu1 %vm208_vm1, %v1606_v24 }
0x101e   :  { %2282 = vmatprep.mubr.msk.bf16.mxu1 %vm2442_vm0, %v2441_v0  ;;  %2279 = vmatpush3.bf16.msra.mxu1 %v2335_v40 }
0x101f   :  { %2280 = vmatprep.subr.bf16.mxu1 %v2441_v0 }
0x1022   :  { %2281 = vmatpush3.bf16.msra.mxu1 %v2336_v1 }
0x10f0   :  { %v1666_v58 = vpop.f32.mrb[40].mxu1 }
0x10f1   :  { %v1667_v33 = vadd.f32 %v1983_v32, %v1666_v58  ;;  %v2256_v4 = vpop.f32.mrb[41].mxu1 }
0x10f2   :  { %v1669_v62 = vpop.f32.mrb[42].mxu1 }
0x10f3   :  { %v1675_v7 = vmul.f32 0.70710677, %v1667_v33  ;;  %v1670_v11 = vadd.f32 %v1983_v32, %v1669_v62  ;;  %v2257_v34 = vpop.f32.mrb[43].mxu1  ;;  %v1673_v6 = vmul.f32 0.5, %v1667_v33 }
0x10f5   :  { %2421 = verf.f32 %v1675_v7  ;;  %v1676_v35 = vmul.f32 0.70710677, %v1670_v11  ;;  %v1674_v59 = vmul.f32 0.5, %v1670_v11 }
0x10f7   :  { %2423 = verf.f32 %v1676_v35 }
0x10ff   :  { %v2422_v55 = vpop.eup %2421 }
0x1100   :  { %v1679_v37 = vadd.f32 1.0, %v2422_v55 }
0x1101   :  { %v2424_v56 = vpop.eup %2423 }
0x1102   :  { %v1680_v60 = vadd.f32 1.0, %v2424_v56  ;;  %v1681_v61 = vmul.f32 %v1679_v37, %v1673_v6 }
0x1104   :  { %v1682_v38 = vmul.f32 %v1680_v60, %v1674_v59 }
0x1106   :  { %v1683_v63 = vpack.c.bf16 %v1682_v38, %v1681_v61 }
0x1108   :  { %2275 = vmatmul.mubr.bf16.vlgmr.msra.gmra.mrb[36].mxu0 %v1683_v63 }
0x11db   :  { %v1783_v41 = vpop.f32.mrb[36].mxu0 }
0x11dc   :  { %v1790_v43 = vadd.f32 %v1783_v41, %v3014_v2  ;;  %v2276_v45 = vpop.f32.mrb[37].mxu0 }
0x11dd   :  { %v1786_v48 = vpop.f32.mrb[38].mxu0 }
0x11de   :  { %v1791_v49 = vadd.f32 %v1786_v48, %v3017_v44  ;;  %v2277_v26 = vpop.f32.mrb[39].mxu0  ;;  %v1797_v50 = vadd.f32 %v2011_v47, %v1790_v43 }
0x11e0   :  { %v1798_v51 = vadd.f32 %v2011_v47, %v1791_v49 }
0x11e2   :  { %v1799_v0 = vpack.c.bf16 %v1798_v51, %v1797_v50 }
0x11e4   :  { %2283 = vmatmul.mubr.msk.bf16.vlgmr.msra.gmra.mrb[44].mxu1 %vm208_vm1, %v1799_v0 }
0x12b7   :  { %v1860_v29 = vpop.f32.mrb[44].mxu1 }
0x12b8   :  { %v1861_v2 = vadd.f32 %v2012_v52, %v1860_v29  ;;  %v2284_v53 = vpop.f32.mrb[45].mxu1 }
0x12b9   :  { %v1863_v54 = vpop.f32.mrb[46].mxu1 }
0x12ba   :  { %v2016_v57 = vmul.f32 -1.442695, %v1861_v2  ;;  %v1864_v3 = vadd.f32 %v2012_v52, %v1863_v54  ;;  %v2285_v5 = vpop.f32.mrb[47].mxu1 }
0x12bc   :  { %2425 = vpow2.f32 %v2016_v57  ;;  %v2017_v8 = vmul.f32 -1.442695, %v1864_v3 }
0x12be   :  { %2427 = vpow2.f32 %v2017_v8 }
0x12c6   :  { %v2426_v44 = vpop.eup %2425 }
0x12c7   :  { %v1873_v9 = vadd.f32 1.0, %v2426_v44 }
0x12c8   :  { %v2428_v10 = vpop.eup %2427 }
0x12c9   :  { %2429 = vrcp.f32 %v1873_v9  ;;  %v1874_v12 = vadd.f32 1.0, %v2428_v10 }
0x12cb   :  { %2431 = vrcp.f32 %v1874_v12 }
0x12d3   :  { %v2430_v13 = vpop.eup %2429 }
0x12d4   :  { %1879 = vst [vmem:[%s3123_s23] sm:$0xff] %v2430_v13 }
0x12d5   :  { %v2432_v14 = vpop.eup %2431 }
0x12d6   :  { %1880 = vst [vmem:[%s3123_s23 + $0x8] sm:$0xff] %v2432_v14 }

</bundles_post_ra>
